<compile_context>
chip_gen: v6e
topology: v6e:2x2x1
jax: 0.10.0
libtpu: 0.0.40
codegen_flags: <defaults>
</compile_context>

<pallas_src>
import jax
import jax.numpy as jnp
from jax import lax
from jax.experimental import pallas as pl
from jax.experimental.pallas import tpu as pltpu

EPS = 1e-5   # nn.BatchNorm1d default eps
LANE = 128   # TPU lane width (storage padding; tile sizes at scale should be 256-multiples)


def _pad_to(n, m=LANE):
    return ((n + m - 1) // m) * m


def _pad2d(a, rows, cols):
    r, c = a.shape
    return jnp.pad(a, ((0, rows - r), (0, cols - c)))


def _vmem_limit_bytes():
    """Generation-aware scoped-VMEM budget (default scoped limit is 16/32 MiB, far below
    physical); leave ~25% headroom under physical capacity."""
    try:
        cap = int(pltpu.get_tpu_info().vmem_capacity_bytes)
    except Exception:
        cap = 64 * 1024 * 1024   # conservative: v7x per-core VMEM
    return int(min(cap * 3 // 4, 100 * 1024 * 1024))


# ---------------------------------------------------------------------------
# Fused forward: pool + backbone Linear/ReLU + full projector MLP, both views.
# grid=(2,) over views ("parallel" -> one view per TensorCore on v7x).
# ---------------------------------------------------------------------------
def _vicreg_forward(params, x1, x2, norm_embed, relu_embed, weight_pipeline_mode):
    B, C, H, W = x1.shape
    HW = H * W
    # Free reshapes (contiguous), no HBM copy — unlike the previous jnp.stack.
    x1 = x1.reshape(B, C, HW)
    x2 = x2.reshape(B, C, HW)

    bb_w, bb_b = params["bb_w"], params["bb_b"]
    weights, biases, layer_cfg = params["proj_w"], params["proj_b"], params["proj_cfg"]
    dout_p = weights[-1].shape[1]
    n_layers = len(layer_cfg)

    def kernel(x1_hbm, x2_hbm, bb_w_ref, bb_b_ref, *rest):
        proj_refs = rest[:-3]
        o_ref, xbuf, sem = rest[-3], rest[-2], rest[-1]
        v = pl.program_id(0)

        # Fetch only this view's raw input from HBM (each view read exactly once).
        # TODO(synk): at realistic sizes, prefetch view v+1 while computing view v.
        @pl.when(v == 0)
        def _():
            cp = pltpu.make_async_copy(x1_hbm, xbuf, sem)
            cp.start(); cp.wait()

        @pl.when(v == 1)
        def _():
            cp = pltpu.make_async_copy(x2_hbm, xbuf, sem)
            cp.start(); cp.wait()

        # Backbone stand-in: global average pool (1/HW folded into bb_w) + Linear + ReLU.
        pooled = jnp.sum(xbuf[...], axis=-1)                       # (B, C) lane-axis reduce
        y = jnp.dot(pooled.astype(jnp.bfloat16), bb_w_ref[...],
                    preferred_element_type=jnp.float32)            # MXU, f32 accumulation
        y = jnp.maximum(y + bb_b_ref[...], 0.0)
        y = y.astype(jnp.bfloat16)                                 # bf16 between layers

        ri = 0
        for li, (eff_bias, use_bn, use_relu) in enumerate(layer_cfg):  # unrolled at trace
            w_ref = proj_refs[ri]; ri += 1
            y = jnp.dot(y, w_ref[...], preferred_element_type=jnp.float32)   # MXU
            if eff_bias:                                           # only when NOT followed by BN
                b_ref = proj_refs[ri]; ri += 1
                y = y + b_ref[...]
            if use_bn:
                # One-pass training-mode BatchNorm1d stats over this view's batch,
                # biased variance, identity affine. Padded lanes stay exactly zero.
                s1 = jnp.mean(y, axis=0, keepdims=True)
                s2 = jnp.mean(y * y, axis=0, keepdims=True)
                var = jnp.maximum(s2 - s1 * s1, 0.0)
                y = (y - s1) * lax.rsqrt(var + EPS)                # rsqrt -> EUP slot
            if use_relu:
                y = jnp.maximum(y, 0.0)
            if li < n_layers - 1:
                y = y.astype(jnp.bfloat16)                         # keep activations bf16

        if norm_embed:   # F.normalize(dim=-1); padded lanes are zero so the norm is exact
            y = y * lax.rsqrt(jnp.sum(y * y, axis=-1, keepdims=True) + 1e-12)
        if relu_embed:
            y = jnp.maximum(y, 0.0)
        o_ref[...] = y.astype(o_ref.dtype)                         # lane-dense store

    def const_spec(shape):
        nd = len(shape)
        return pl.BlockSpec(shape, lambda v: (0,) * nd,
                            pipeline_mode=weight_pipeline_mode)

    operands = [x1, x2, bb_w, bb_b]
    in_specs = [pl.BlockSpec(memory_space=pl.ANY),   # raw HBM, manual per-view DMA
                pl.BlockSpec(memory_space=pl.ANY),
                const_spec(bb_w.shape),
                const_spec(bb_b.shape)]
    for w, b, (eff_bias, _, _) in zip(weights, biases, layer_cfg):
        operands.append(w)
        in_specs.append(const_spec(w.shape))
        if eff_bias:
            operands.append(b)
            in_specs.append(const_spec(b.shape))

    z = pl.pallas_call(
        kernel,
        out_shape=jax.ShapeDtypeStruct((2, B, dout_p), jnp.float32),
        grid=(2,),
        in_specs=in_specs,
        out_specs=pl.BlockSpec((None, B, dout_p), lambda v: (v, 0, 0)),
        scratch_shapes=[pltpu.VMEM((B, C, HW), x1.dtype),
                        pltpu.SemaphoreType.DMA(())],
        compiler_params=pltpu.CompilerParams(
            dimension_semantics=("parallel",),          # one view per TC on v7x
            vmem_limit_bytes=_vmem_limit_bytes(),
        ),
    )(*operands)

    z = z[..., : params["out_dim"]]                     # drop lane padding once, plain JAX
    return z[0], z[1]


def vicreg_forward(params, x1, x2, norm_embed=False, relu_embed=False):
    try:
        # Single-buffer the constant-index weight/bias blocks (their block index never
        # changes across the view grid axis) to halve their resident VMEM footprint.
        return _vicreg_forward(params, x1, x2, norm_embed, relu_embed, pl.Buffered(1))
    except Exception:
        # TODO(synk): fall back to default buffering if this jax/Mosaic version rejects
        #             pipeline_mode on pallas_call BlockSpecs.
        return _vicreg_forward(params, x1, x2, norm_embed, relu_embed, None)


# ---------------------------------------------------------------------------
# Deterministic parameter init (mirrors VICReg._init_weights: Linear weights
# ~ N(0, 0.01), biases = 0). Weights are zero-padded to 128-multiples, cast to
# bf16 once; the backbone weight is pre-scaled by 1/(H*W). Biases that are
# immediately followed by identity-affine training-mode BN are dropped (dead).
# ---------------------------------------------------------------------------
def init_params(key, C, HW, repre_dim, projector_hidden,
                proj_bias=True, proj_bias_last=False, norm_last=False):
    if isinstance(projector_hidden, int):
        projector_hidden = (projector_hidden,)
    if norm_last:
        proj_bias_last = proj_bias

    rp = _pad_to(repre_dim)
    keys = jax.random.split(key, 1 + len(projector_hidden))

    # Backbone stand-in linear: C -> repre_dim (padded), avg-pool scale folded in.
    bb_w = 0.01 * jax.random.normal(keys[0], (C, repre_dim), jnp.float32)
    bb_w = _pad2d(bb_w / HW, C, rp).astype(jnp.bfloat16)
    bb_b = jnp.zeros((1, rp), jnp.float32)

    dims = (repre_dim,) + tuple(projector_hidden)
    weights, biases, layer_cfg = [], [], []
    for i in range(len(projector_hidden)):
        din, dout = dims[i], dims[i + 1]
        dinp, doutp = _pad_to(din), _pad_to(dout)
        w = 0.01 * jax.random.normal(keys[1 + i], (din, dout), jnp.float32)
        weights.append(_pad2d(w, dinp, doutp).astype(jnp.bfloat16))
        is_last = i == len(projector_hidden) - 1
        has_bias = bool(proj_bias_last if is_last else proj_bias)
        use_bn = bool(norm_last if is_last else True)
        use_relu = not is_last
        # Bias directly followed by identity-affine training-mode BN is exactly
        # cancelled by mean subtraction -> remove it (zero numerical change).
        eff_bias = has_bias and not use_bn
        biases.append(jnp.zeros((1, doutp), jnp.float32) if eff_bias else None)
        layer_cfg.append((eff_bias, use_bn, use_relu))

    return dict(bb_w=bb_w, bb_b=bb_b, proj_w=weights, proj_b=biases,
                proj_cfg=tuple(layer_cfg), out_dim=dims[-1])


if __name__ == "__main__":
    key = jax.random.PRNGKey(0)
    B, C, H, W = 2, 4, 16, 16
    REPRE_DIM = 32
    PROJ_HIDDEN = (64, 64, 64)

    k1, k2, kp = jax.random.split(key, 3)
    x1 = jax.random.normal(k1, (B, C, H, W), jnp.float32)
    x2 = jax.random.normal(k2, (B, C, H, W), jnp.float32)

    params = init_params(kp, C, H * W, REPRE_DIM, PROJ_HIDDEN)

    z1, z2 = vicreg_forward(params, x1, x2)
    jax.block_until_ready((z1, z2))

    assert z1.shape == (B, PROJ_HIDDEN[-1])
    assert z2.shape == (B, PROJ_HIDDEN[-1])
    assert bool(jnp.all(jnp.isfinite(z1))) and bool(jnp.all(jnp.isfinite(z2)))
    print("KERNEL_OK")
</pallas_src>

<mosaic_0001>
module attributes {stable_mosaic.version = 11 : i64} {
  func.func @kernel(%arg0: i32, %arg1: memref<2x4x256xf32, #tpu.memory_space<any>>, %arg2: memref<2x4x256xf32, #tpu.memory_space<any>>, %arg3: memref<4x128xbf16, #tpu.memory_space<vmem>>, %arg4: memref<1x128xf32, #tpu.memory_space<vmem>>, %arg5: memref<128x128xbf16, #tpu.memory_space<vmem>>, %arg6: memref<128x128xbf16, #tpu.memory_space<vmem>>, %arg7: memref<128x128xbf16, #tpu.memory_space<vmem>>, %arg8: memref<1x2x128xf32, #tpu.memory_space<vmem>>, %arg9: memref<2x4x256xf32, #tpu.memory_space<vmem>>, %arg10: memref<!tpu.dma_semaphore, #tpu.memory_space<semaphore_mem>>) attributes {dimension_semantics = [#tpu.dimension_semantics<parallel>], iteration_bounds = array<i64: 2>, scalar_prefetch = 0 : i64, scratch_operands = 2 : i64, tpu.core_type = #tpu.core_type<tc>, window_params = [{}, {}, {pipeline_mode = #tpu.pipeline_mode<synchronous>, transform_indices = @transform_2, window_bounds = array<i64: 4, 128>}, {pipeline_mode = #tpu.pipeline_mode<synchronous>, transform_indices = @transform_3, window_bounds = array<i64: 1, 128>}, {pipeline_mode = #tpu.pipeline_mode<synchronous>, transform_indices = @transform_4, window_bounds = array<i64: 128, 128>}, {pipeline_mode = #tpu.pipeline_mode<synchronous>, transform_indices = @transform_5, window_bounds = array<i64: 128, 128>}, {pipeline_mode = #tpu.pipeline_mode<synchronous>, transform_indices = @transform_6, window_bounds = array<i64: 128, 128>}, {transform_indices = @transform_7, window_bounds = array<i64: 1, 2, 128>}]} {
    %c0_i32 = arith.constant 0 : i32
    %0 = arith.cmpi eq, %arg0, %c0_i32 : i32
    %1 = arith.extui %0 : i1 to i32
    %c0_i32_0 = arith.constant 0 : i32
    %2 = arith.cmpi ne, %1, %c0_i32_0 : i32
    scf.if %2 {
      tpu.enqueue_dma source(%arg1 : memref<2x4x256xf32, #tpu.memory_space<any>>) target(%arg9 : memref<2x4x256xf32, #tpu.memory_space<vmem>>) target_semaphore(%arg10 : memref<!tpu.dma_semaphore, #tpu.memory_space<semaphore_mem>>)
      tpu.wait_dma2 semaphore(%arg10 : memref<!tpu.dma_semaphore, #tpu.memory_space<semaphore_mem>>) src(%arg1 : memref<2x4x256xf32, #tpu.memory_space<any>>) dst(%arg9 : memref<2x4x256xf32, #tpu.memory_space<vmem>>)
    } else {
    }
    %c1_i32 = arith.constant 1 : i32
    %3 = arith.cmpi eq, %arg0, %c1_i32 : i32
    %4 = arith.extui %3 : i1 to i32
    %c0_i32_1 = arith.constant 0 : i32
    %5 = arith.cmpi ne, %4, %c0_i32_1 : i32
    scf.if %5 {
      tpu.enqueue_dma source(%arg2 : memref<2x4x256xf32, #tpu.memory_space<any>>) target(%arg9 : memref<2x4x256xf32, #tpu.memory_space<vmem>>) target_semaphore(%arg10 : memref<!tpu.dma_semaphore, #tpu.memory_space<semaphore_mem>>)
      tpu.wait_dma2 semaphore(%arg10 : memref<!tpu.dma_semaphore, #tpu.memory_space<semaphore_mem>>) src(%arg2 : memref<2x4x256xf32, #tpu.memory_space<any>>) dst(%arg9 : memref<2x4x256xf32, #tpu.memory_space<vmem>>)
    } else {
    }
    %c0 = arith.constant 0 : index
    %c0_2 = arith.constant 0 : index
    %c0_3 = arith.constant 0 : index
    %6 = vector.load %arg9[%c0, %c0_2, %c0_3] : memref<2x4x256xf32, #tpu.memory_space<vmem>>, vector<2x4x256xf32>
    %cst = arith.constant dense<0.000000e+00> : vector<2x4xf32>
    %7 = vector.multi_reduction <add>, %6, %cst [2] : vector<2x4x256xf32> to vector<2x4xf32>
    %8 = arith.truncf %7 : vector<2x4xf32> to vector<2x4xbf16>
    %c0_4 = arith.constant 0 : index
    %c0_5 = arith.constant 0 : index
    %9 = vector.load %arg3[%c0_4, %c0_5] : memref<4x128xbf16, #tpu.memory_space<vmem>>, vector<4x128xbf16>
    %cst_6 = arith.constant dense<0.000000e+00> : vector<2x128xf32>
    %10 = tpu.matmul %8, %9, %cst_6 {dimension_numbers = #tpu.dot_dimension_numbers<[1], [0], [0], [1], [0, 0, 1, 1], [], []>} : vector<2x4xbf16>, vector<4x128xbf16>, vector<2x128xf32> -> vector<2x128xf32>
    %c0_7 = arith.constant 0 : index
    %c0_8 = arith.constant 0 : index
    %11 = vector.load %arg4[%c0_7, %c0_8] : memref<1x128xf32, #tpu.memory_space<vmem>>, vector<1x128xf32>
    %12 = vector.broadcast %11 : vector<1x128xf32> to vector<2x128xf32>
    %13 = arith.addf %10, %12 : vector<2x128xf32>
    %cst_9 = arith.constant 0.000000e+00 : f32
    %14 = vector.broadcast %cst_9 : f32 to vector<2x128xf32>
    %15 = arith.maximumf %13, %14 : vector<2x128xf32>
    %16 = arith.truncf %15 : vector<2x128xf32> to vector<2x128xbf16>
    %c0_10 = arith.constant 0 : index
    %c0_11 = arith.constant 0 : index
    %17 = vector.load %arg5[%c0_10, %c0_11] : memref<128x128xbf16, #tpu.memory_space<vmem>>, vector<128x128xbf16>
    %cst_12 = arith.constant dense<0.000000e+00> : vector<2x128xf32>
    %18 = tpu.matmul %16, %17, %cst_12 {dimension_numbers = #tpu.dot_dimension_numbers<[1], [0], [0], [1], [0, 0, 1, 1], [], []>} : vector<2x128xbf16>, vector<128x128xbf16>, vector<2x128xf32> -> vector<2x128xf32>
    %cst_13 = arith.constant dense<0.000000e+00> : vector<128xf32>
    %19 = vector.multi_reduction <add>, %18, %cst_13 [0] : vector<2x128xf32> to vector<128xf32>
    %20 = vector.shape_cast %19 : vector<128xf32> to vector<1x128xf32>
    %cst_14 = arith.constant 2.000000e+00 : f32
    %21 = vector.broadcast %cst_14 : f32 to vector<1x128xf32>
    %22 = arith.divf %20, %21 : vector<1x128xf32>
    %23 = arith.mulf %18, %18 : vector<2x128xf32>
    %cst_15 = arith.constant dense<0.000000e+00> : vector<128xf32>
    %24 = vector.multi_reduction <add>, %23, %cst_15 [0] : vector<2x128xf32> to vector<128xf32>
    %25 = vector.shape_cast %24 : vector<128xf32> to vector<1x128xf32>
    %cst_16 = arith.constant 2.000000e+00 : f32
    %26 = vector.broadcast %cst_16 : f32 to vector<1x128xf32>
    %27 = arith.divf %25, %26 : vector<1x128xf32>
    %28 = arith.mulf %22, %22 : vector<1x128xf32>
    %29 = arith.subf %27, %28 : vector<1x128xf32>
    %cst_17 = arith.constant 0.000000e+00 : f32
    %30 = vector.broadcast %cst_17 : f32 to vector<1x128xf32>
    %31 = arith.maximumf %29, %30 : vector<1x128xf32>
    %32 = vector.broadcast %22 : vector<1x128xf32> to vector<2x128xf32>
    %33 = arith.subf %18, %32 : vector<2x128xf32>
    %cst_18 = arith.constant 9.99999974E-6 : f32
    %34 = vector.broadcast %cst_18 : f32 to vector<1x128xf32>
    %35 = arith.addf %31, %34 : vector<1x128xf32>
    %36 = math.rsqrt %35 : vector<1x128xf32>
    %37 = vector.broadcast %36 : vector<1x128xf32> to vector<2x128xf32>
    %38 = arith.mulf %33, %37 : vector<2x128xf32>
    %cst_19 = arith.constant 0.000000e+00 : f32
    %39 = vector.broadcast %cst_19 : f32 to vector<2x128xf32>
    %40 = arith.maximumf %38, %39 : vector<2x128xf32>
    %41 = arith.truncf %40 : vector<2x128xf32> to vector<2x128xbf16>
    %c0_20 = arith.constant 0 : index
    %c0_21 = arith.constant 0 : index
    %42 = vector.load %arg6[%c0_20, %c0_21] : memref<128x128xbf16, #tpu.memory_space<vmem>>, vector<128x128xbf16>
    %cst_22 = arith.constant dense<0.000000e+00> : vector<2x128xf32>
    %43 = tpu.matmul %41, %42, %cst_22 {dimension_numbers = #tpu.dot_dimension_numbers<[1], [0], [0], [1], [0, 0, 1, 1], [], []>} : vector<2x128xbf16>, vector<128x128xbf16>, vector<2x128xf32> -> vector<2x128xf32>
    %cst_23 = arith.constant dense<0.000000e+00> : vector<128xf32>
    %44 = vector.multi_reduction <add>, %43, %cst_23 [0] : vector<2x128xf32> to vector<128xf32>
    %45 = vector.shape_cast %44 : vector<128xf32> to vector<1x128xf32>
    %cst_24 = arith.constant 2.000000e+00 : f32
    %46 = vector.broadcast %cst_24 : f32 to vector<1x128xf32>
    %47 = arith.divf %45, %46 : vector<1x128xf32>
    %48 = arith.mulf %43, %43 : vector<2x128xf32>
    %cst_25 = arith.constant dense<0.000000e+00> : vector<128xf32>
    %49 = vector.multi_reduction <add>, %48, %cst_25 [0] : vector<2x128xf32> to vector<128xf32>
    %50 = vector.shape_cast %49 : vector<128xf32> to vector<1x128xf32>
    %cst_26 = arith.constant 2.000000e+00 : f32
    %51 = vector.broadcast %cst_26 : f32 to vector<1x128xf32>
    %52 = arith.divf %50, %51 : vector<1x128xf32>
    %53 = arith.mulf %47, %47 : vector<1x128xf32>
    %54 = arith.subf %52, %53 : vector<1x128xf32>
    %cst_27 = arith.constant 0.000000e+00 : f32
    %55 = vector.broadcast %cst_27 : f32 to vector<1x128xf32>
    %56 = arith.maximumf %54, %55 : vector<1x128xf32>
    %57 = vector.broadcast %47 : vector<1x128xf32> to vector<2x128xf32>
    %58 = arith.subf %43, %57 : vector<2x128xf32>
    %cst_28 = arith.constant 9.99999974E-6 : f32
    %59 = vector.broadcast %cst_28 : f32 to vector<1x128xf32>
    %60 = arith.addf %56, %59 : vector<1x128xf32>
    %61 = math.rsqrt %60 : vector<1x128xf32>
    %62 = vector.broadcast %61 : vector<1x128xf32> to vector<2x128xf32>
    %63 = arith.mulf %58, %62 : vector<2x128xf32>
    %cst_29 = arith.constant 0.000000e+00 : f32
    %64 = vector.broadcast %cst_29 : f32 to vector<2x128xf32>
    %65 = arith.maximumf %63, %64 : vector<2x128xf32>
    %66 = arith.truncf %65 : vector<2x128xf32> to vector<2x128xbf16>
    %c0_30 = arith.constant 0 : index
    %c0_31 = arith.constant 0 : index
    %67 = vector.load %arg7[%c0_30, %c0_31] : memref<128x128xbf16, #tpu.memory_space<vmem>>, vector<128x128xbf16>
    %cst_32 = arith.constant dense<0.000000e+00> : vector<2x128xf32>
    %68 = tpu.matmul %66, %67, %cst_32 {dimension_numbers = #tpu.dot_dimension_numbers<[1], [0], [0], [1], [0, 0, 1, 1], [], []>} : vector<2x128xbf16>, vector<128x128xbf16>, vector<2x128xf32> -> vector<2x128xf32>
    %c0_33 = arith.constant 0 : index
    %c0_34 = arith.constant 0 : index
    %c0_35 = arith.constant 0 : index
    %69 = vector.load %arg8[%c0_33, %c0_34, %c0_35] : memref<1x2x128xf32, #tpu.memory_space<vmem>>, vector<1x2x128xf32>
    %70 = vector.shape_cast %69 : vector<1x2x128xf32> to vector<2x128xf32>
    %71 = vector.shape_cast %68 : vector<2x128xf32> to vector<1x2x128xf32>
    tpu.vector_store %arg8[%c0_33, %c0_34, %c0_35], %71 {strides = array<i32>} : memref<1x2x128xf32, #tpu.memory_space<vmem>>, vector<1x2x128xf32>,
    return
  }
  func.func @transform_2(%arg0: i32) -> (i32, i32) {
    %c0_i32 = arith.constant 0 : i32
    %c0_i32_0 = arith.constant 0 : i32
    %c0_i32_1 = arith.constant 0 : i32
    return %c0_i32, %c0_i32_0 : i32, i32
  }
  func.func @transform_3(%arg0: i32) -> (i32, i32) {
    %c0_i32 = arith.constant 0 : i32
    %c0_i32_0 = arith.constant 0 : i32
    %c0_i32_1 = arith.constant 0 : i32
    return %c0_i32, %c0_i32_0 : i32, i32
  }
  func.func @transform_4(%arg0: i32) -> (i32, i32) {
    %c0_i32 = arith.constant 0 : i32
    %c0_i32_0 = arith.constant 0 : i32
    %c0_i32_1 = arith.constant 0 : i32
    return %c0_i32, %c0_i32_0 : i32, i32
  }
  func.func @transform_5(%arg0: i32) -> (i32, i32) {
    %c0_i32 = arith.constant 0 : i32
    %c0_i32_0 = arith.constant 0 : i32
    %c0_i32_1 = arith.constant 0 : i32
    return %c0_i32, %c0_i32_0 : i32, i32
  }
  func.func @transform_6(%arg0: i32) -> (i32, i32) {
    %c0_i32 = arith.constant 0 : i32
    %c0_i32_0 = arith.constant 0 : i32
    %c0_i32_1 = arith.constant 0 : i32
    return %c0_i32, %c0_i32_0 : i32, i32
  }
  func.func @transform_7(%arg0: i32) -> (i32, i32, i32) {
    %c0_i32 = arith.constant 0 : i32
    %c0_i32_0 = arith.constant 0 : i32
    %c0_i32_1 = arith.constant 0 : i32
    return %arg0, %c0_i32, %c0_i32_0 : i32, i32, i32
  }
}

module attributes {stable_mosaic.version = 11 : i64} {
  func.func @kernel(%arg0: i32, %arg1: memref<2x4x256xf32, #tpu.memory_space<any>>, %arg2: memref<2x4x256xf32, #tpu.memory_space<any>>, %arg3: memref<4x128xbf16, #tpu.memory_space<vmem>>, %arg4: memref<1x128xf32, #tpu.memory_space<vmem>>, %arg5: memref<128x128xbf16, #tpu.memory_space<vmem>>, %arg6: memref<128x128xbf16, #tpu.memory_space<vmem>>, %arg7: memref<128x128xbf16, #tpu.memory_space<vmem>>, %arg8: memref<1x2x128xf32, #tpu.memory_space<vmem>>, %arg9: memref<2x4x256xf32, #tpu.memory_space<vmem>>, %arg10: memref<!tpu.dma_semaphore, #tpu.memory_space<semaphore_mem>>) attributes {dimension_semantics = [#tpu.dimension_semantics<parallel>], iteration_bounds = array<i64: 2>, scalar_prefetch = 0 : i64, scratch_operands = 2 : i64, tpu.core_type = #tpu.core_type<tc>, window_params = [{}, {}, {pipeline_mode = #tpu.pipeline_mode<synchronous>, transform_indices = @transform_2, window_bounds = array<i64: 4, 128>}, {pipeline_mode = #tpu.pipeline_mode<synchronous>, transform_indices = @transform_3, window_bounds = array<i64: 1, 128>}, {pipeline_mode = #tpu.pipeline_mode<synchronous>, transform_indices = @transform_4, window_bounds = array<i64: 128, 128>}, {pipeline_mode = #tpu.pipeline_mode<synchronous>, transform_indices = @transform_5, window_bounds = array<i64: 128, 128>}, {pipeline_mode = #tpu.pipeline_mode<synchronous>, transform_indices = @transform_6, window_bounds = array<i64: 128, 128>}, {transform_indices = @transform_7, window_bounds = array<i64: 1, 2, 128>}]} {
    %c0_i32 = arith.constant 0 : i32
    %0 = arith.cmpi eq, %arg0, %c0_i32 : i32
    %1 = arith.extui %0 : i1 to i32
    %c0_i32_0 = arith.constant 0 : i32
    %2 = arith.cmpi ne, %1, %c0_i32_0 : i32
    scf.if %2 {
      tpu.enqueue_dma source(%arg1 : memref<2x4x256xf32, #tpu.memory_space<any>>) target(%arg9 : memref<2x4x256xf32, #tpu.memory_space<vmem>>) target_semaphore(%arg10 : memref<!tpu.dma_semaphore, #tpu.memory_space<semaphore_mem>>)
      tpu.wait_dma2 semaphore(%arg10 : memref<!tpu.dma_semaphore, #tpu.memory_space<semaphore_mem>>) src(%arg1 : memref<2x4x256xf32, #tpu.memory_space<any>>) dst(%arg9 : memref<2x4x256xf32, #tpu.memory_space<vmem>>)
    } else {
    }
    %c1_i32 = arith.constant 1 : i32
    %3 = arith.cmpi eq, %arg0, %c1_i32 : i32
    %4 = arith.extui %3 : i1 to i32
    %c0_i32_1 = arith.constant 0 : i32
    %5 = arith.cmpi ne, %4, %c0_i32_1 : i32
    scf.if %5 {
      tpu.enqueue_dma source(%arg2 : memref<2x4x256xf32, #tpu.memory_space<any>>) target(%arg9 : memref<2x4x256xf32, #tpu.memory_space<vmem>>) target_semaphore(%arg10 : memref<!tpu.dma_semaphore, #tpu.memory_space<semaphore_mem>>)
      tpu.wait_dma2 semaphore(%arg10 : memref<!tpu.dma_semaphore, #tpu.memory_space<semaphore_mem>>) src(%arg2 : memref<2x4x256xf32, #tpu.memory_space<any>>) dst(%arg9 : memref<2x4x256xf32, #tpu.memory_space<vmem>>)
    } else {
    }
    %c0 = arith.constant 0 : index
    %c0_2 = arith.constant 0 : index
    %c0_3 = arith.constant 0 : index
    %6 = vector.load %arg9[%c0, %c0_2, %c0_3] : memref<2x4x256xf32, #tpu.memory_space<vmem>>, vector<2x4x256xf32>
    %cst = arith.constant dense<0.000000e+00> : vector<2x4xf32>
    %7 = vector.multi_reduction <add>, %6, %cst [2] : vector<2x4x256xf32> to vector<2x4xf32>
    %8 = arith.truncf %7 : vector<2x4xf32> to vector<2x4xbf16>
    %c0_4 = arith.constant 0 : index
    %c0_5 = arith.constant 0 : index
    %9 = vector.load %arg3[%c0_4, %c0_5] : memref<4x128xbf16, #tpu.memory_space<vmem>>, vector<4x128xbf16>
    %cst_6 = arith.constant dense<0.000000e+00> : vector<2x128xf32>
    %10 = tpu.matmul %8, %9, %cst_6 {dimension_numbers = #tpu.dot_dimension_numbers<[1], [0], [0], [1], [0, 0, 1, 1], [], []>} : vector<2x4xbf16>, vector<4x128xbf16>, vector<2x128xf32> -> vector<2x128xf32>
    %c0_7 = arith.constant 0 : index
    %c0_8 = arith.constant 0 : index
    %11 = vector.load %arg4[%c0_7, %c0_8] : memref<1x128xf32, #tpu.memory_space<vmem>>, vector<1x128xf32>
    %12 = vector.broadcast %11 : vector<1x128xf32> to vector<2x128xf32>
    %13 = arith.addf %10, %12 : vector<2x128xf32>
    %cst_9 = arith.constant 0.000000e+00 : f32
    %14 = vector.broadcast %cst_9 : f32 to vector<2x128xf32>
    %15 = arith.maximumf %13, %14 : vector<2x128xf32>
    %16 = arith.truncf %15 : vector<2x128xf32> to vector<2x128xbf16>
    %c0_10 = arith.constant 0 : index
    %c0_11 = arith.constant 0 : index
    %17 = vector.load %arg5[%c0_10, %c0_11] : memref<128x128xbf16, #tpu.memory_space<vmem>>, vector<128x128xbf16>
    %cst_12 = arith.constant dense<0.000000e+00> : vector<2x128xf32>
    %18 = tpu.matmul %16, %17, %cst_12 {dimension_numbers = #tpu.dot_dimension_numbers<[1], [0], [0], [1], [0, 0, 1, 1], [], []>} : vector<2x128xbf16>, vector<128x128xbf16>, vector<2x128xf32> -> vector<2x128xf32>
    %cst_13 = arith.constant dense<0.000000e+00> : vector<128xf32>
    %19 = vector.multi_reduction <add>, %18, %cst_13 [0] : vector<2x128xf32> to vector<128xf32>
    %20 = vector.shape_cast %19 : vector<128xf32> to vector<1x128xf32>
    %cst_14 = arith.constant 2.000000e+00 : f32
    %21 = vector.broadcast %cst_14 : f32 to vector<1x128xf32>
    %22 = arith.divf %20, %21 : vector<1x128xf32>
    %23 = arith.mulf %18, %18 : vector<2x128xf32>
    %cst_15 = arith.constant dense<0.000000e+00> : vector<128xf32>
    %24 = vector.multi_reduction <add>, %23, %cst_15 [0] : vector<2x128xf32> to vector<128xf32>
    %25 = vector.shape_cast %24 : vector<128xf32> to vector<1x128xf32>
    %cst_16 = arith.constant 2.000000e+00 : f32
    %26 = vector.broadcast %cst_16 : f32 to vector<1x128xf32>
    %27 = arith.divf %25, %26 : vector<1x128xf32>
    %28 = arith.mulf %22, %22 : vector<1x128xf32>
    %29 = arith.subf %27, %28 : vector<1x128xf32>
    %cst_17 = arith.constant 0.000000e+00 : f32
    %30 = vector.broadcast %cst_17 : f32 to vector<1x128xf32>
    %31 = arith.maximumf %29, %30 : vector<1x128xf32>
    %32 = vector.broadcast %22 : vector<1x128xf32> to vector<2x128xf32>
    %33 = arith.subf %18, %32 : vector<2x128xf32>
    %cst_18 = arith.constant 9.99999974E-6 : f32
    %34 = vector.broadcast %cst_18 : f32 to vector<1x128xf32>
    %35 = arith.addf %31, %34 : vector<1x128xf32>
    %36 = math.rsqrt %35 : vector<1x128xf32>
    %37 = vector.broadcast %36 : vector<1x128xf32> to vector<2x128xf32>
    %38 = arith.mulf %33, %37 : vector<2x128xf32>
    %cst_19 = arith.constant 0.000000e+00 : f32
    %39 = vector.broadcast %cst_19 : f32 to vector<2x128xf32>
    %40 = arith.maximumf %38, %39 : vector<2x128xf32>
    %41 = arith.truncf %40 : vector<2x128xf32> to vector<2x128xbf16>
    %c0_20 = arith.constant 0 : index
    %c0_21 = arith.constant 0 : index
    %42 = vector.load %arg6[%c0_20, %c0_21] : memref<128x128xbf16, #tpu.memory_space<vmem>>, vector<128x128xbf16>
    %cst_22 = arith.constant dense<0.000000e+00> : vector<2x128xf32>
    %43 = tpu.matmul %41, %42, %cst_22 {dimension_numbers = #tpu.dot_dimension_numbers<[1], [0], [0], [1], [0, 0, 1, 1], [], []>} : vector<2x128xbf16>, vector<128x128xbf16>, vector<2x128xf32> -> vector<2x128xf32>
    %cst_23 = arith.constant dense<0.000000e+00> : vector<128xf32>
    %44 = vector.multi_reduction <add>, %43, %cst_23 [0] : vector<2x128xf32> to vector<128xf32>
    %45 = vector.shape_cast %44 : vector<128xf32> to vector<1x128xf32>
    %cst_24 = arith.constant 2.000000e+00 : f32
    %46 = vector.broadcast %cst_24 : f32 to vector<1x128xf32>
    %47 = arith.divf %45, %46 : vector<1x128xf32>
    %48 = arith.mulf %43, %43 : vector<2x128xf32>
    %cst_25 = arith.constant dense<0.000000e+00> : vector<128xf32>
    %49 = vector.multi_reduction <add>, %48, %cst_25 [0] : vector<2x128xf32> to vector<128xf32>
    %50 = vector.shape_cast %49 : vector<128xf32> to vector<1x128xf32>
    %cst_26 = arith.constant 2.000000e+00 : f32
    %51 = vector.broadcast %cst_26 : f32 to vector<1x128xf32>
    %52 = arith.divf %50, %51 : vector<1x128xf32>
    %53 = arith.mulf %47, %47 : vector<1x128xf32>
    %54 = arith.subf %52, %53 : vector<1x128xf32>
    %cst_27 = arith.constant 0.000000e+00 : f32
    %55 = vector.broadcast %cst_27 : f32 to vector<1x128xf32>
    %56 = arith.maximumf %54, %55 : vector<1x128xf32>
    %57 = vector.broadcast %47 : vector<1x128xf32> to vector<2x128xf32>
    %58 = arith.subf %43, %57 : vector<2x128xf32>
    %cst_28 = arith.constant 9.99999974E-6 : f32
    %59 = vector.broadcast %cst_28 : f32 to vector<1x128xf32>
    %60 = arith.addf %56, %59 : vector<1x128xf32>
    %61 = math.rsqrt %60 : vector<1x128xf32>
    %62 = vector.broadcast %61 : vector<1x128xf32> to vector<2x128xf32>
    %63 = arith.mulf %58, %62 : vector<2x128xf32>
    %cst_29 = arith.constant 0.000000e+00 : f32
    %64 = vector.broadcast %cst_29 : f32 to vector<2x128xf32>
    %65 = arith.maximumf %63, %64 : vector<2x128xf32>
    %66 = arith.truncf %65 : vector<2x128xf32> to vector<2x128xbf16>
    %c0_30 = arith.constant 0 : index
    %c0_31 = arith.constant 0 : index
    %67 = vector.load %arg7[%c0_30, %c0_31] : memref<128x128xbf16, #tpu.memory_space<vmem>>, vector<128x128xbf16>
    %cst_32 = arith.constant dense<0.000000e+00> : vector<2x128xf32>
    %68 = tpu.matmul %66, %67, %cst_32 {dimension_numbers = #tpu.dot_dimension_numbers<[1], [0], [0], [1], [0, 0, 1, 1], [], []>} : vector<2x128xbf16>, vector<128x128xbf16>, vector<2x128xf32> -> vector<2x128xf32>
    %c0_33 = arith.constant 0 : index
    %c0_34 = arith.constant 0 : index
    %c0_35 = arith.constant 0 : index
    %69 = vector.load %arg8[%c0_33, %c0_34, %c0_35] : memref<1x2x128xf32, #tpu.memory_space<vmem>>, vector<1x2x128xf32>
    %70 = vector.shape_cast %69 : vector<1x2x128xf32> to vector<2x128xf32>
    %71 = vector.shape_cast %68 : vector<2x128xf32> to vector<1x2x128xf32>
    tpu.vector_store %arg8[%c0_33, %c0_34, %c0_35], %71 {strides = array<i32>} : memref<1x2x128xf32, #tpu.memory_space<vmem>>, vector<1x2x128xf32>,
    return
  }
  func.func @transform_2(%arg0: i32) -> (i32, i32) {
    %c0_i32 = arith.constant 0 : i32
    %c0_i32_0 = arith.constant 0 : i32
    %c0_i32_1 = arith.constant 0 : i32
    return %c0_i32, %c0_i32_0 : i32, i32
  }
  func.func @transform_3(%arg0: i32) -> (i32, i32) {
    %c0_i32 = arith.constant 0 : i32
    %c0_i32_0 = arith.constant 0 : i32
    %c0_i32_1 = arith.constant 0 : i32
    return %c0_i32, %c0_i32_0 : i32, i32
  }
  func.func @transform_4(%arg0: i32) -> (i32, i32) {
    %c0_i32 = arith.constant 0 : i32
    %c0_i32_0 = arith.constant 0 : i32
    %c0_i32_1 = arith.constant 0 : i32
    return %c0_i32, %c0_i32_0 : i32, i32
  }
  func.func @transform_5(%arg0: i32) -> (i32, i32) {
    %c0_i32 = arith.constant 0 : i32
    %c0_i32_0 = arith.constant 0 : i32
    %c0_i32_1 = arith.constant 0 : i32
    return %c0_i32, %c0_i32_0 : i32, i32
  }
  func.func @transform_6(%arg0: i32) -> (i32, i32) {
    %c0_i32 = arith.constant 0 : i32
    %c0_i32_0 = arith.constant 0 : i32
    %c0_i32_1 = arith.constant 0 : i32
    return %c0_i32, %c0_i32_0 : i32, i32
  }
  func.func @transform_7(%arg0: i32) -> (i32, i32, i32) {
    %c0_i32 = arith.constant 0 : i32
    %c0_i32_0 = arith.constant 0 : i32
    %c0_i32_1 = arith.constant 0 : i32
    return %arg0, %c0_i32, %c0_i32_0 : i32, i32, i32
  }
}

</mosaic_0001>

<bundles_post_ra>
// kernel: tpu_custom_call.1
= control target key start
LH: loop header
LB: loop body
LE: loop exit
PB: predicated region body
PF: predicated region fallthrough
CT: control target
= control target key end

     0   :  { %12 = vsyncpa [#allocation5], 0  ;;  %s1576_s0 = inlined_call_operand.hbm [shape: f32[2,4,256], index: 0, kind: input, shape index: {}]   ;;  %s1577_s1 = inlined_call_operand.hbm [shape: f32[2,4,256], index: 1, kind: input, shape index: {}]   ;;  %s1578_s2 = inlined_call_operand.vmem [shape: bf16[4,128], index: 2, kind: input, shape index: {}]   ;;  %s1579_s3 = inlined_call_operand.vmem [shape: f32[1,128], index: 3, kind: input, shape index: {}]   ;;  %s1580_s4 = inlined_call_operand.hbm [shape: bf16[128,128], index: 4, kind: input, shape index: {}]   ;;  %s1581_s5 = inlined_call_operand.hbm [shape: bf16[128,128], index: 5, kind: input, shape index: {}]   ;;  %s1582_s6 = inlined_call_operand.hbm [shape: bf16[128,128], index: 6, kind: input, shape index: {}]   ;;  %s1583_s7 = inlined_call_operand.hbm [shape: f32[2,2,128], index: 7, kind: output, shape index: {}]  }
   0x1   :  { %13 = vsyncpa [#allocation8], 0 }
   0x2   :  { %14 = vsyncpa [#allocation6], 0 }
   0x3   :  { %16 = vsyncpa [#allocation6 + $0x1], 0  ;;  %s1354_s24 = smov 0   ;;  %s1356_s25 = smov 0  }
   0x4   :  { %s1358_s26 = smov 0   ;;  %s1360_s27 = smov 0  }
   0x5 LB: > { %s1375_s28 = sadd.s32 4294967295, %s1303_s27   ;;  %s850_s29 = sadd.s32 4294967294, %s1303_s27   ;;  %s1303_s27 = sphi %s1360_s27, %s1608_s27   ;;  %s1299_s26 = sphi %s1358_s26, %s1607_s26   ;;  %s1295_s25 = sphi %s1356_s25, %s1606_s25   ;;  %s1291_s24 = sphi %s1354_s24, %s1605_s24  }
   0x6   : > { %s1379_s30 = sadd.s32 1, %s1303_s27   ;;  %s134_s8 = sadd.s32 1, %s1299_s26 }
   0x7   : > { %s131_s9 = ssub.s32 %s1303_s27, %s1379_s30  ;;  %p144_p0 = scmp.ne.s32.totalorder %s1299_s26, %s1295_s25 }
   0x8   : > { %p132_p1 = scmp.eq.s32.totalorder %s131_s9, 0  ;;  %p1584_p2 = scmp.eq.s32.totalorder %s1375_s28, 1 }
   0x9   : > { %p150_p3 = scmp.ne.s32.totalorder %s1295_s25, %s1291_s24  ;;  %p151_p4 = scmp.eq.s32.totalorder %s850_s29, 1 }
   0xa   : > { %s1390_s10 = scalar_select %p132_p1, %s1299_s26, %s134_s8  }
   0xb   : > { %p1394_p5 = por %p1584_p2, %p144_p0  ;;  %p1398_p6 = por %p151_p4, %p150_p3 }
   0xc   : > { %p851_p7 = scmp.ge.s32.totalorder %s1303_s27, 1  ;;  %p158_p8 = scmp.lt.s32.totalorder %s1303_s27, 3 }
   0xd   : > { %s1587_s11 = scalar_select %p1394_p5, 1, 0 }
   0xe   : > { %s1588_s12 = scalar_select %p1398_p6, 1, 0 }
   0xf   : > { %p1585_p9 = scmp.eq.s32.totalorder %s1375_s28, 0  ;;  %p1405_p10 = pnand %p851_p7, %p158_p8 }
  0x10   : > { %s1305_s14 = smov [#allocation7]   ;;  %s1306_s17 = smov [#allocation4]  }
  0x11   : > { %p1008_p11 = pneg %p1405_p10  ;;  %s189_s15 = sshll.u32 %s1305_s14, 4  ;;  %s190_s15 = int_to_ptr.vmem [resolvable:$true] %s189_s15 }
  0x12   : > { %s176_s18 = sshll.u32 %s1306_s17, 4  ;;  %s1307_s19 = smov [#allocation9]   ;;  %s177_s18 = int_to_ptr.vmem [resolvable:$true] %s176_s18 }
  0x13   : > { %p1413_p12 = pnand %p1585_p9, %p1008_p11  ;;  %s202_s20 = sshll.u32 %s1307_s19, 4  ;;  %s203_s20 = int_to_ptr.vmem [resolvable:$true] %s202_s20 }
  0x14   : > { %s1112_s21 = scalar_lea.vmem %s190_s15, 1024  ;;  %p1120_p4 = scmp.lt.s32.totalorder %s190_s15, %s190_s15 }
  0x15   : > { %p1103_p13 = pneg %p1413_p12  ;;  %p1113_p0 = scmp.ne.s32.totalorder %s190_s15, %s1112_s21 }
  0x16   : > { %p1121_p7 = scmp.lt.s32.totalorder %s1112_s21, %s1112_s21 }
  0x17   : > { %p1115_p1 = pnand %p1113_p0, %p1103_p13 }
  0x18   : > { %p1122_p8 = por %p1121_p7, %p1120_p4 }
  0x19   : > { %p1116_p3 = pneg %p1115_p1 }
  0x1b   : > { %p1123_p11 = pnand %p1122_p8, %p1116_p3 }
  0x1d   : > { %1126 = shalt.err (!%p1123_p11)
}
  0x1e   : > { %s1308_s22 = smov 64   ;;  %s1309_s23 = smov 4  }
  0x1f   : > { %1014 = dma.hbm_to_vmem [thread:$0]  (!%p1413_p12), %s1581_s5, 1024, %s190_s15, [#allocation8], %s1308_s22, %s1308_s22, %s1309_s23  }
  0x20   : > { %s1138_s9 = scalar_lea.vmem %s177_s18, 1024  ;;  %p1146_p9 = scmp.lt.s32.totalorder %s177_s18, %s177_s18 }
  0x21   : > { %p1139_p2 = scmp.ne.s32.totalorder %s177_s18, %s1138_s9  ;;  %p1147_p6 = scmp.lt.s32.totalorder %s1138_s9, %s1138_s9 }
  0x23   : > { %p1141_p0 = pnand %p1139_p2, %p1103_p13  ;;  %p1148_p4 = por %p1147_p6, %p1146_p9 }
  0x25   : > { %p1142_p1 = pneg %p1141_p0 }
  0x27   : > { %p1149_p3 = pnand %p1148_p4, %p1142_p1 }
  0x29   : > { %1152 = shalt.err (!%p1149_p3)
}
  0x2a   : > { %1011 = dma.hbm_to_vmem [thread:$0]  (!%p1413_p12), %s1580_s4, 1024, %s177_s18, [#allocation5], %s1308_s22, %s1308_s22, %s1309_s23  }
  0x2b   : > { %s1164_s15 = scalar_lea.vmem %s203_s20, 1024  ;;  %p1172_p11 = scmp.lt.s32.totalorder %s203_s20, %s203_s20 }
  0x2c   : > { %p1165_p7 = scmp.ne.s32.totalorder %s203_s20, %s1164_s15  ;;  %p1173_p0 = scmp.lt.s32.totalorder %s1164_s15, %s1164_s15 }
  0x2e   : > { %p1167_p8 = pnand %p1165_p7, %p1103_p13  ;;  %p1174_p5 = por %p1173_p0, %p1172_p11 }
  0x30   : > { %p1168_p2 = pneg %p1167_p8 }
  0x32   : > { %p1175_p6 = pnand %p1174_p5, %p1168_p2 }
  0x34   : > { %1178 = shalt.err (!%p1175_p6)
}
  0x35   : > { %1017 = dma.hbm_to_vmem [thread:$0]  (!%p1413_p12), %s1582_s6, 1024, %s203_s20, [#allocation8], %s1308_s22, %s1308_s22, %s1309_s23  }
  0x36   : > { %218 = sbr.rel (%p1405_p10) target bundleno = 1133 (0x46d), region = 40  ;;  %p1591_p9 = scmp.eq.s32.totalorder (!%p1405_p10), %s1375_s28, 0 }
  0x3b   : > { %1270 = dma.done.wait (%p1591_p9), [#allocation5], 1024   ;;  %p1592_p13 = pmov %p1591_p9 }
  0x3c   : > { %p1593_p1 = pmov %p1591_p9 }
  0x3d   : > { %1272 = vsyncadd (%p1592_p13), [#allocation5], 4294966272 }
  0x3e   : > { %1274 = dma.done.wait (%p1593_p1), [#allocation8], 2048   ;;  %p1594_p5 = pmov %p1593_p1 }
  0x3f   : > { %s246_s16 = sand.u32 1, %s1295_s25   ;;  %s1310_s13 = smov [#allocation2]  }
  0x40   : > { %1276 = vsyncadd (%p1594_p5), [#allocation8], 4294965248  ;;  %s1456_s18 = sshll.u32 %s246_s16, 1  ;;  %s261_s20 = sshll.u32 %s1310_s13, 4  ;;  %s262_s20 = int_to_ptr.vmem [resolvable:$true] %s261_s20 }
  0x41   : > { %s1189_s22 = scalar_lea.vmem %s262_s20, 256  ;;  %p1595_p12 = pmov %p1593_p1 }
  0x42   : > { %p1190_p10 = scmp.ne.s32.totalorder %s262_s20, %s1189_s22  ;;  %p1196_p7 = scmp.lt.s32.totalorder %s262_s20, %s262_s20 }
  0x43   : > { %p1197_p8 = scmp.lt.s32.totalorder %s1189_s22, %s1189_s22 }
  0x44   : > { %p1191_p4 = pnand %p1190_p10, %p1595_p12 }
  0x45   : > { %p1198_p2 = por %p1197_p8, %p1196_p7 }
  0x46   : > { %p1192_p3 = pneg %p1191_p4 }
  0x48   : > { %p1199_p11 = pnand %p1198_p2, %p1192_p3 }
  0x4a   : > { %1202 = shalt.err (!%p1199_p11)  }
  0x4b   : > { %p1596_p0 = pmov %p1593_p1  ;;  %s248_s8 = scalar_lea.vmem [#allocation10], %s1456_s18 }
  0x4d   : > { %1001 = dma.hbm_to_vmem [thread:$0]  (%p1596_p0), %s1576_s0, 256, %s262_s20, [#allocation3] }
  0x4e   : > { %p1597_p6 = pmov %p1596_p0 }
  0x4f   : > { %p1598_p9 = pmov %p1596_p0 }
  0x50   : > { %1278 = dma.done.wait (%p1597_p6), [#allocation3], 256 }
  0x51   : > { %1280 = vsyncadd (%p1598_p9), [#allocation3], 4294967040  ;;  %p1599_p13 = scmp.eq.s32.totalorder %s1375_s28, 1 }
  0x53   : > { %p1215_p1 = pnand %p1190_p10, %p1599_p13 }
  0x55   : > { %p1216_p5 = pneg %p1215_p1 }
  0x57   : > { %p1223_p12 = pnand %p1216_p5, %p1198_p2 }
  0x59   : > { %1226 = shalt.err (!%p1223_p12)  }
  0x5a   : > { %p1600_p4 = pmov %p1599_p13 }
  0x5c   : > { %1004 = dma.hbm_to_vmem [thread:$0]  (%p1600_p4), %s1577_s1, 256, %s262_s20, [#allocation3] }
  0x5d   : > { %p1601_p3 = pmov %p1600_p4 }
  0x5f   : > { %1282 = dma.done.wait (%p1601_p3), [#allocation3], 256  ;;  %p1602_p7 = pmov %p1601_p3 }
  0x60   : > { %vm298_vm0 = vcmask 1043456   ;;  %v290_v0 = vld [vmem:[#allocation2] sm:$0xff]  ;;  %v291_v1 = vld [vmem:[#allocation2 + $0x8] sm:$0xff]  ;;  %vm340_vm1 = vcmask 1041408   ;;  %v1311_v11 = vmov 0.0   ;;  %vm1312_vm2 = vmmov 0  }
  0x61   : > { %1284 = vsyncadd (%p1602_p7), [#allocation3], 4294967040  ;;  %v294_v2 = vcombine.high %v290_v0, %v290_v0  ;;  %v299_v3 = vsel %vm298_vm0, %v290_v0, 0.0  ;;  %v295_v4 = vcombine.high %v291_v1, %v291_v1  ;;  %v304_v5 = vsel %vm298_vm0, %v291_v1, 0.0  ;;  %v311_v10 = vld [vmem:[%s1578_s2] sm:$0x3]  ;;  %922 = vmatprep.subr.bf16.mxu0 %v1311_v11  ;;  %928 = vmatprep.subr.bf16.mxu1 %v1311_v11 }
  0x62   : > { %v342_v12 = vsel %vm340_vm1, %v311_v10, 0  ;;  %924 = vmatprep.mubr.msk.bf16.mxu0 %vm1312_vm2, %v1311_v11  ;;  %944 = vmatprep.mubr.msk.bf16.mxu1 %vm1312_vm2, %v1311_v11  ;;  %v1073_v13 = vld [vmem:[#allocation4 + $0x38] sm:$0xff]   ;;  %v1074_v14 = vld [vmem:[#allocation4 + $0x30] sm:$0xff]   ;;  %v1075_v15 = vld [vmem:[#allocation4 + $0x28] sm:$0xff]   ;;  %v323_v19 = vlaneseq  ;;  %vm333_vm3 = vcmask 1041409   ;;  %vm336_vm4 = vcmask 31744  }
  0x63   : > { %v300_v6 = vsel %vm298_vm0, %v294_v2, 0.0  ;;  %v305_v7 = vsel %vm298_vm0, %v295_v4, 0.0  ;;  %923 = vmatpush3.bf16.msra.mxu0 %v342_v12  ;;  %929 = vmatpush3.bf16.msra.mxu1 %v1073_v13  ;;  %v1076_v16 = vld [vmem:[#allocation4 + $0x20] sm:$0xff]   ;;  %v1077_v17 = vld [vmem:[#allocation4 + $0x18] sm:$0xff]   ;;  %v1078_v18 = vld [vmem:[#allocation4 + $0x10] sm:$0xff]   ;;  %s889_s13 = sshll.u32 %s1375_s28, 5 }
  0x64   : > { %v301_v8 = vadd.f32 %v300_v6, %v299_v3  ;;  %v306_v9 = vadd.f32 %v305_v7, %v304_v5  ;;  %948 = vmatprep.subr.bf16.mxu0 %v1311_v11  ;;  %930 = vmatprep.subr.bf16.mxu1 %v1311_v11  ;;  %v324_v21 = vand.u32 127, %v323_v19  ;;  %v326_v22 = vshrl.u32 %v323_v19, 7  ;;  %v1079_v33 = vld [vmem:[#allocation4 + $0x8] sm:$0xff]   ;;  %v1080_v34 = vld [vmem:[#allocation4] sm:$0xff]   ;;  %v862_v35 = vld [vmem:[%s1579_s3] ss:$0 sm:$0xff]  ;;  %s1531_s29 = scalar_lea.hbm %s1583_s7, %s889_s13 }
  0x65   : > { %v1081_v43 = vld [vmem:[#allocation7 + $0x38] sm:$0xff]   ;;  %v1082_v44 = vld [vmem:[#allocation7 + $0x30] sm:$0xff]   ;;  %v1083_v45 = vld [vmem:[#allocation7 + $0x28] sm:$0xff]   ;;  %s766_s20 = sshll.u32 %s248_s8, 4  ;;  %s753_s9 = scalar_lea.sflag [#allocation6], %s246_s16  ;;  %s1533_s20 = int_to_ptr.vmem [resolvable:$true] %s766_s20 }
  0x66   : > { %302 = vadd.xlane.f32.xlu0 %v301_v8  ;;  %v327_v25 = vsub.s32 %v324_v21, %v326_v22  ;;  %v1084_v46 = vld [vmem:[#allocation7 + $0x20] sm:$0xff]   ;;  %v1085_v47 = vld [vmem:[#allocation7 + $0x18] sm:$0xff]   ;;  %v1086_v48 = vld [vmem:[#allocation7 + $0x10] sm:$0xff]   ;;  %s1227_s14 = scalar_lea.vmem %s1533_s20, 32  ;;  %p1603_p8 = scmp.ne.s32.totalorder %s1587_s11, 0 }
  0x67   : > { %931 = vmatpush3.bf16.msra.mxu1 %v1074_v14  ;;  %v1087_v49 = vld [vmem:[#allocation7 + $0x8] sm:$0xff]   ;;  %v1088_v50 = vld [vmem:[#allocation7] sm:$0xff]   ;;  %v1090_v19 = vld [vmem:[#allocation9 + $0x30] sm:$0xff]   ;;  %p1228_p10 = scmp.ne.s32.totalorder %s1533_s20, %s1227_s14  ;;  %s1313_s28 = smov [#allocation10]  }
  0x68   : > { %932 = vmatprep.subr.bf16.mxu1 %v1311_v11  ;;  %v1092_v21 = vld [vmem:[#allocation9 + $0x20] sm:$0xff]   ;;  %v1093_v22 = vld [vmem:[#allocation9 + $0x18] sm:$0xff]   ;;  %s1231_s17 = sshll.u32 %s1313_s28, 4  ;;  %s1232_s17 = int_to_ptr.vmem [resolvable:$false] %s1231_s17 }
  0x69   : > { %p1229_p2 = pnand %p1228_p10, %p1603_p8  ;;  %s1233_s15 = scalar_lea.vmem %s1232_s17, 64 }
  0x6a   : > { %307 = vadd.xlane.f32.xlu0 %v306_v9  ;;  %p1234_p0 = scmp.lt.s32.totalorder %s1533_s20, %s1232_s17  ;;  %p1235_p6 = scmp.lt.s32.totalorder %s1233_s15, %s1227_s14 }
  0x6b   : > { %933 = vmatpush3.bf16.msra.mxu1 %v1075_v15  ;;  %p1230_p11 = pneg %p1229_p2 }
  0x6c   : > { %934 = vmatprep.subr.bf16.mxu1 %v1311_v11  ;;  %p1236_p9 = por %p1235_p6, %p1234_p0 }
  0x6e   : > { %p1237_p13 = pnand %p1236_p9, %p1230_p11 }
  0x6f   : > { %935 = vmatpush3.bf16.msra.mxu1 %v1076_v16 }
  0x70   : > { %936 = vmatprep.subr.bf16.mxu1 %v1311_v11 }
  0x73   : > { %937 = vmatpush3.bf16.msra.mxu1 %v1077_v17 }
  0x74   : > { %938 = vmatprep.subr.bf16.mxu1 %v1311_v11 }
  0x77   : > { %939 = vmatpush3.bf16.msra.mxu1 %v1078_v18  ;;  %v1089_v18 = vld [vmem:[#allocation9 + $0x38] sm:$0xff]  }
  0x78   : > { %940 = vmatprep.subr.bf16.mxu1 %v1311_v11 }
  0x7b   : > { %941 = vmatpush3.bf16.msra.mxu1 %v1079_v33 }
  0x7c   : > { %942 = vmatprep.subr.bf16.mxu1 %v1311_v11 }
  0x7f   : > { %943 = vmatpush3.bf16.msra.mxu1 %v1080_v34 }
  0x80   : > { %968 = vmatprep.subr.bf16.mxu1 %v1311_v11 }
  0xef   : > { %v303_v20 = vpop.xlane.xlu0 %302 }
  0xf0   : > { %v309_v23 = vpack.c.bf16 %v303_v20, %v303_v20  ;;  %v1091_v20 = vld [vmem:[#allocation9 + $0x28] sm:$0xff]  }
  0xf2   : > { %v321_v26 = vunpack.c.l.b16 %v309_v23  ;;  %v1094_v23 = vld [vmem:[#allocation9 + $0x10] sm:$0xff]  }
  0xf3   : > { %v308_v24 = vpop.xlane.xlu0 %307 }
  0xf4   : > { %v310_v27 = vpack.c.bf16 %v308_v24, %v308_v24  ;;  %v328_v29 = vrot.slane %v321_v26, %v327_v25  ;;  %v1095_v24 = vld [vmem:[#allocation9 + $0x8] sm:$0xff]  }
  0xf6   : > { %v322_v28 = vunpack.c.l.b16 %v310_v27 }
  0xf8   : > { %v332_v30 = vrot.slane %v322_v28, %v327_v25  ;;  %v1096_v25 = vld [vmem:[#allocation9] sm:$0xff]  }
  0xfa   : > { %v334_v31 = vsel %vm333_vm3, %v332_v30, %v328_v29 }
  0xfb   : > { %v335_v32 = vpack.c.b16 %v334_v31, %v334_v31 }
  0xfd   : > { %925 = vmatmul.mubr.msk.bf16.vlgmr.msra.gmra.mxu0 %vm336_vm4, %v335_v32 }
  0xfe   : > { %964 = vmatprep.mubr.msk.bf16.mxu0 %vm1312_vm2, %v1311_v11  ;;  %949 = vmatpush3.bf16.msra.mxu0 %v1081_v43 }
  0xff   : > { %950 = vmatprep.subr.bf16.mxu0 %v1311_v11 }
 0x102   : > { %951 = vmatpush3.bf16.msra.mxu0 %v1082_v44 }
 0x103   : > { %952 = vmatprep.subr.bf16.mxu0 %v1311_v11 }
 0x106   : > { %953 = vmatpush3.bf16.msra.mxu0 %v1083_v45 }
 0x107   : > { %954 = vmatprep.subr.bf16.mxu0 %v1311_v11 }
 0x10a   : > { %955 = vmatpush3.bf16.msra.mxu0 %v1084_v46 }
 0x10b   : > { %956 = vmatprep.subr.bf16.mxu0 %v1311_v11 }
 0x10e   : > { %957 = vmatpush3.bf16.msra.mxu0 %v1085_v47 }
 0x10f   : > { %958 = vmatprep.subr.bf16.mxu0 %v1311_v11 }
 0x112   : > { %959 = vmatpush3.bf16.msra.mxu0 %v1086_v48 }
 0x113   : > { %960 = vmatprep.subr.bf16.mxu0 %v1311_v11 }
 0x116   : > { %961 = vmatpush3.bf16.msra.mxu0 %v1087_v49 }
 0x117   : > { %962 = vmatprep.subr.bf16.mxu0 %v1311_v11 }
 0x11a   : > { %963 = vmatpush3.bf16.msra.mxu0 %v1088_v50 }
 0x1bd   : > { %v378_v36 = vpop.f32.mrf.mxu0 }
 0x1be   : > { %v379_v37 = vadd.f32 %v862_v35, %v378_v36 }
 0x1bf   : > { %v926_v38 = vpop.f32.mrf.mxu0 }
 0x1c0   : > { %v384_v39 = vmax.f32 %v379_v37, 0.0 }
 0x1c1   : > { %v381_v40 = vpop.f32.mrf.mxu0 }
 0x1c2   : > { %v385_v41 = vpack.c.bf16 %v384_v39, %v384_v39 }
 0x1c3   : > { %v927_v42 = vpop.f32.mrf.mxu0 }
 0x1c4   : > { %945 = vmatmul.mubr.bf16.vlgmr.msra.gmra.mxu1 %v385_v41 }
 0x1c5   : > { %984 = vmatprep.mubr.msk.bf16.mxu1 %vm1312_vm2, %v1311_v11  ;;  %969 = vmatpush3.bf16.msra.mxu1 %v1089_v18 }
 0x1c6   : > { %970 = vmatprep.subr.bf16.mxu1 %v1311_v11 }
 0x1c9   : > { %971 = vmatpush3.bf16.msra.mxu1 %v1090_v19 }
 0x1ca   : > { %972 = vmatprep.subr.bf16.mxu1 %v1311_v11 }
 0x1cd   : > { %973 = vmatpush3.bf16.msra.mxu1 %v1091_v20 }
 0x1ce   : > { %974 = vmatprep.subr.bf16.mxu1 %v1311_v11 }
 0x1d1   : > { %975 = vmatpush3.bf16.msra.mxu1 %v1092_v21 }
 0x1d2   : > { %976 = vmatprep.subr.bf16.mxu1 %v1311_v11 }
 0x1d5   : > { %977 = vmatpush3.bf16.msra.mxu1 %v1093_v22 }
 0x1d6   : > { %978 = vmatprep.subr.bf16.mxu1 %v1311_v11 }
 0x1d9   : > { %979 = vmatpush3.bf16.msra.mxu1 %v1094_v23 }
 0x1da   : > { %980 = vmatprep.subr.bf16.mxu1 %v1311_v11 }
 0x1dd   : > { %981 = vmatpush3.bf16.msra.mxu1 %v1095_v24 }
 0x1de   : > { %982 = vmatprep.subr.bf16.mxu1 %v1311_v11 }
 0x1e1   : > { %983 = vmatpush3.bf16.msra.mxu1 %v1096_v25 }
 0x284   : > { %v484_v51 = vpop.f32.mrf.mxu1 }
 0x285   : > { %v490_v52 = vsel %vm340_vm1, %v484_v51, 0.0  ;;  %v499_v53 = vmul.f32 %v484_v51, %v484_v51 }
 0x286   : > { %v491_v54 = vrot.slane %v490_v52, 4  ;;  %v946_v55 = vpop.f32.mrf.mxu1 }
 0x287   : > { %v500_v56 = vsel %vm340_vm1, %v499_v53, 0.0 }
 0x288   : > { %v492_v57 = vadd.f32 %v491_v54, %v490_v52  ;;  %v501_v58 = vrot.slane %v500_v56, 4  ;;  %v487_v59 = vpop.f32.mrf.mxu1 }
 0x28a   : > { %v493_v60 = vrot.slane %v492_v57, 2  ;;  %v502_v61 = vadd.f32 %v501_v58, %v500_v56  ;;  %v947_v62 = vpop.f32.mrf.mxu1 }
 0x28c   : > { %v494_v63 = vadd.f32 %v493_v60, %v492_v57  ;;  %v503_v0 = vrot.slane %v502_v61, 2 }
 0x28e   : > { %v495_v1 = vrot.slane %v494_v63, 1  ;;  %v504_v2 = vadd.f32 %v503_v0, %v502_v61 }
 0x290   : > { %v496_v3 = vadd.f32 %v495_v1, %v494_v63  ;;  %v505_v4 = vrot.slane %v504_v2, 1 }
 0x292   : > { %v498_v5 = vmul.f32 0.5, %v496_v3  ;;  %v506_v6 = vadd.f32 %v505_v4, %v504_v2 }
 0x294   : > { %v507_v7 = vmul.f32 0.5, %v506_v6  ;;  %v508_v8 = vmul.f32 %v498_v5, %v498_v5  ;;  %v511_v13 = vsub.f32 %v484_v51, %v498_v5 }
 0x296   : > { %v509_v9 = vsub.f32 %v507_v7, %v508_v8 }
 0x298   : > { %v510_v10 = vmax.f32 %v509_v9, 0.0 }
 0x29a   : > { %v512_v12 = vadd.f32 1e-05, %v510_v10 }
 0x29c   : > { %1097 = vrsqrt.f32 %v512_v12 }
 0x2a9   : > { %v1098_v14 = vpop.eup %1097 }
 0x2aa   : > { %v514_v15 = vmul.f32 %v1098_v14, %v511_v13 }
 0x2ac   : > { %v515_v16 = vmax.f32 %v514_v15, 0.0 }
 0x2ae   : > { %v516_v17 = vpack.c.bf16 %v515_v16, %v515_v16 }
 0x2b0   : > { %965 = vmatmul.mubr.bf16.vlgmr.msra.gmra.mxu0 %v516_v17 }
 0x370   : > { %v615_v26 = vpop.f32.mrf.mxu0 }
 0x371   : > { %v621_v27 = vsel %vm340_vm1, %v615_v26, 0.0  ;;  %v629_v28 = vmul.f32 %v615_v26, %v615_v26 }
 0x372   : > { %v622_v29 = vrot.slane %v621_v27, 4  ;;  %v966_v30 = vpop.f32.mrf.mxu0 }
 0x373   : > { %v630_v31 = vsel %vm340_vm1, %v629_v28, 0.0 }
 0x374   : > { %v623_v32 = vadd.f32 %v622_v29, %v621_v27  ;;  %v631_v33 = vrot.slane %v630_v31, 4  ;;  %v618_v34 = vpop.f32.mrf.mxu0 }
 0x376   : > { %v624_v35 = vrot.slane %v623_v32, 2  ;;  %v632_v36 = vadd.f32 %v631_v33, %v630_v31  ;;  %v967_v37 = vpop.f32.mrf.mxu0 }
 0x378   : > { %v625_v38 = vadd.f32 %v624_v35, %v623_v32  ;;  %v633_v39 = vrot.slane %v632_v36, 2 }
 0x37a   : > { %v626_v40 = vrot.slane %v625_v38, 1  ;;  %v634_v11 = vadd.f32 %v633_v39, %v632_v36 }
 0x37c   : > { %v627_v41 = vadd.f32 %v626_v40, %v625_v38  ;;  %v635_v42 = vrot.slane %v634_v11, 1 }
 0x37e   : > { %v628_v43 = vmul.f32 0.5, %v627_v41  ;;  %v636_v44 = vadd.f32 %v635_v42, %v634_v11 }
 0x380   : > { %v637_v45 = vmul.f32 0.5, %v636_v44  ;;  %v638_v46 = vmul.f32 %v628_v43, %v628_v43  ;;  %v641_v50 = vsub.f32 %v615_v26, %v628_v43 }
 0x382   : > { %v639_v47 = vsub.f32 %v637_v45, %v638_v46 }
 0x384   : > { %v640_v48 = vmax.f32 %v639_v47, 0.0 }
 0x386   : > { %v642_v49 = vadd.f32 1e-05, %v640_v48 }
 0x388   : > { %1099 = vrsqrt.f32 %v642_v49 }
 0x395   : > { %v1100_v51 = vpop.eup %1099 }
 0x396   : > { %v644_v52 = vmul.f32 %v1100_v51, %v641_v50 }
 0x398   : > { %v645_v53 = vmax.f32 %v644_v52, 0.0 }
 0x39a   : > { %v646_v54 = vpack.c.bf16 %v645_v53, %v645_v53 }
 0x39c   : > { %985 = vmatmul.mubr.bf16.vlgmr.msra.gmra.mxu1 %v646_v54 }
 0x45c   : > { %v745_v55 = vpop.f32.mrf.mxu1 }
 0x45d   : > { %751 = vst [vmem:[%s248_s8] sm:$0x3] %v745_v55 }
 0x45e   : > { %v986_v56 = vpop.f32.mrf.mxu1 }
 0x45f   : > { %1240 = shalt.err (!%p1237_p13)
}
 0x460   : > { %s1241_s18 = scalar_lea.hbm %s1531_s29, 32  ;;  %s1245_s19 = scalar_lea.hbm %s1583_s7, 64 }
 0x461   : > { %p1242_p1 = scmp.ne.s32.totalorder %s1531_s29, %s1241_s18  ;;  %p1246_p4 = scmp.lt.s32.totalorder %s1531_s29, %s1583_s7 }
 0x462   : > { %p1247_p3 = scmp.lt.s32.totalorder %s1245_s19, %s1241_s18 }
 0x463   : > { %p1243_p5 = pnand %p1242_p1, %p1603_p8 }
 0x464   : > { %p1248_p7 = por %p1247_p3, %p1246_p4 }
 0x465   : > { %p1244_p12 = pneg %p1243_p5 }
 0x467   : > { %p1249_p10 = pnand %p1248_p7, %p1244_p12 }
 0x469   : > { %1252 = shalt.err (!%p1249_p10)
}
 0x46a   : > { %1006 = dma.vmem_to_hbm [thread:$0]  (%p1603_p8), %s1533_s20, 32, %s1531_s29, %s753_s9   ;;  %v748_v57 = vpop.f32.mrf.mxu1 }
 0x46c   : > { %v987_v58 = vpop.f32.mrf.mxu1 }
 0x46d PF: > { %p1030_p2 = scmp.ge.s32.totalorder %s1303_s27, 2  ;;  %s778_s22 = sand.u32 1, %s1291_s24  }
 0x46e   : > { %p1604_p11 = scmp.ne.s32.totalorder %s1588_s12, 0  ;;  %s779_s23 = scalar_lea.sflag [#allocation6], %s778_s22 }
 0x470   : > { %p1019_p0 = pnand %p1030_p2, %p1604_p11 }
 0x472   : > { %p1020_p6 = pneg %p1019_p0 }
 0x474   : > { %1286 = dma.done.wait (%p1020_p6), %s779_s23, 32  }
 0x475   : > { %1288 = vsyncadd (%p1020_p6), %s779_s23, 4294967264  ;;  %p19_p8 = scmp.ge.s32.totalorder %s1379_s30, 4   ;;  %s1605_s24 = smov %s1295_s25 }
 0x476   : > { %s1606_s25 = smov %s1299_s26  ;;  %s1607_s26 = smov %s1390_s10 }
 0x477   : > { %s1608_s27 = smov %s1379_s30  ;;  %21 = sbr.rel (!%p19_p8) target bundleno = 5 (0x5), region = 101 }
 0x47c   :  { %784 = vsyncpa [#allocation5], 1 }
 0x47d   :  { %786 = vsyncpa [#allocation5 + $0x1], 1 }
 0x47e   :  { %787 = vsyncpa [#allocation8], 1 }
 0x47f   :  { %788 = vsyncpa [#allocation6], 1 }
 0x480   :  { %790 = vsyncpa [#allocation6 + $0x1], 1 }
 0x481   :  { %791 = vsyncmov [#allocation3] }
 0x484   :  { %s792_s27 = vpop.sfrf %791 }
 0x485   :  { %p892_p9 = scmp.ne.s32.totalorder %s792_s27, 0 }
 0x487   :  { %796 = shalt.err (%p892_p9)  }

// kernel: tpu_custom_call.1
= control target key start
LH: loop header
LB: loop body
LE: loop exit
PB: predicated region body
PF: predicated region fallthrough
CT: control target
= control target key end

     0   :  { %12 = vsyncpa [#allocation5], 0  ;;  %s1576_s0 = inlined_call_operand.hbm [shape: f32[2,4,256], index: 0, kind: input, shape index: {}]   ;;  %s1577_s1 = inlined_call_operand.hbm [shape: f32[2,4,256], index: 1, kind: input, shape index: {}]   ;;  %s1578_s2 = inlined_call_operand.vmem [shape: bf16[4,128], index: 2, kind: input, shape index: {}]   ;;  %s1579_s3 = inlined_call_operand.vmem [shape: f32[1,128], index: 3, kind: input, shape index: {}]   ;;  %s1580_s4 = inlined_call_operand.hbm [shape: bf16[128,128], index: 4, kind: input, shape index: {}]   ;;  %s1581_s5 = inlined_call_operand.hbm [shape: bf16[128,128], index: 5, kind: input, shape index: {}]   ;;  %s1582_s6 = inlined_call_operand.hbm [shape: bf16[128,128], index: 6, kind: input, shape index: {}]   ;;  %s1583_s7 = inlined_call_operand.hbm [shape: f32[2,2,128], index: 7, kind: output, shape index: {}]  }
   0x1   :  { %13 = vsyncpa [#allocation8], 0 }
   0x2   :  { %14 = vsyncpa [#allocation6], 0 }
   0x3   :  { %16 = vsyncpa [#allocation6 + $0x1], 0  ;;  %s1354_s24 = smov 0   ;;  %s1356_s25 = smov 0  }
   0x4   :  { %s1358_s26 = smov 0   ;;  %s1360_s27 = smov 0  }
   0x5 LB: > { %s1375_s28 = sadd.s32 4294967295, %s1303_s27   ;;  %s850_s29 = sadd.s32 4294967294, %s1303_s27   ;;  %s1303_s27 = sphi %s1360_s27, %s1608_s27   ;;  %s1299_s26 = sphi %s1358_s26, %s1607_s26   ;;  %s1295_s25 = sphi %s1356_s25, %s1606_s25   ;;  %s1291_s24 = sphi %s1354_s24, %s1605_s24  }
   0x6   : > { %s1379_s30 = sadd.s32 1, %s1303_s27   ;;  %s134_s8 = sadd.s32 1, %s1299_s26 }
   0x7   : > { %s131_s9 = ssub.s32 %s1303_s27, %s1379_s30  ;;  %p144_p0 = scmp.ne.s32.totalorder %s1299_s26, %s1295_s25 }
   0x8   : > { %p132_p1 = scmp.eq.s32.totalorder %s131_s9, 0  ;;  %p1584_p2 = scmp.eq.s32.totalorder %s1375_s28, 1 }
   0x9   : > { %p150_p3 = scmp.ne.s32.totalorder %s1295_s25, %s1291_s24  ;;  %p151_p4 = scmp.eq.s32.totalorder %s850_s29, 1 }
   0xa   : > { %s1390_s10 = scalar_select %p132_p1, %s1299_s26, %s134_s8  }
   0xb   : > { %p1394_p5 = por %p1584_p2, %p144_p0  ;;  %p1398_p6 = por %p151_p4, %p150_p3 }
   0xc   : > { %p851_p7 = scmp.ge.s32.totalorder %s1303_s27, 1  ;;  %p158_p8 = scmp.lt.s32.totalorder %s1303_s27, 3 }
   0xd   : > { %s1587_s11 = scalar_select %p1394_p5, 1, 0 }
   0xe   : > { %s1588_s12 = scalar_select %p1398_p6, 1, 0 }
   0xf   : > { %p1585_p9 = scmp.eq.s32.totalorder %s1375_s28, 0  ;;  %p1405_p10 = pnand %p851_p7, %p158_p8 }
  0x10   : > { %s1305_s14 = smov [#allocation7]   ;;  %s1306_s17 = smov [#allocation4]  }
  0x11   : > { %p1008_p11 = pneg %p1405_p10  ;;  %s189_s15 = sshll.u32 %s1305_s14, 4  ;;  %s190_s15 = int_to_ptr.vmem [resolvable:$true] %s189_s15 }
  0x12   : > { %s176_s18 = sshll.u32 %s1306_s17, 4  ;;  %s1307_s19 = smov [#allocation9]   ;;  %s177_s18 = int_to_ptr.vmem [resolvable:$true] %s176_s18 }
  0x13   : > { %p1413_p12 = pnand %p1585_p9, %p1008_p11  ;;  %s202_s20 = sshll.u32 %s1307_s19, 4  ;;  %s203_s20 = int_to_ptr.vmem [resolvable:$true] %s202_s20 }
  0x14   : > { %s1112_s21 = scalar_lea.vmem %s190_s15, 1024  ;;  %p1120_p4 = scmp.lt.s32.totalorder %s190_s15, %s190_s15 }
  0x15   : > { %p1103_p13 = pneg %p1413_p12  ;;  %p1113_p0 = scmp.ne.s32.totalorder %s190_s15, %s1112_s21 }
  0x16   : > { %p1121_p7 = scmp.lt.s32.totalorder %s1112_s21, %s1112_s21 }
  0x17   : > { %p1115_p1 = pnand %p1113_p0, %p1103_p13 }
  0x18   : > { %p1122_p8 = por %p1121_p7, %p1120_p4 }
  0x19   : > { %p1116_p3 = pneg %p1115_p1 }
  0x1b   : > { %p1123_p11 = pnand %p1122_p8, %p1116_p3 }
  0x1d   : > { %1126 = shalt.err (!%p1123_p11)
}
  0x1e   : > { %s1308_s22 = smov 64   ;;  %s1309_s23 = smov 4  }
  0x1f   : > { %1014 = dma.hbm_to_vmem [thread:$0]  (!%p1413_p12), %s1581_s5, 1024, %s190_s15, [#allocation8], %s1308_s22, %s1308_s22, %s1309_s23  }
  0x20   : > { %s1138_s9 = scalar_lea.vmem %s177_s18, 1024  ;;  %p1146_p9 = scmp.lt.s32.totalorder %s177_s18, %s177_s18 }
  0x21   : > { %p1139_p2 = scmp.ne.s32.totalorder %s177_s18, %s1138_s9  ;;  %p1147_p6 = scmp.lt.s32.totalorder %s1138_s9, %s1138_s9 }
  0x23   : > { %p1141_p0 = pnand %p1139_p2, %p1103_p13  ;;  %p1148_p4 = por %p1147_p6, %p1146_p9 }
  0x25   : > { %p1142_p1 = pneg %p1141_p0 }
  0x27   : > { %p1149_p3 = pnand %p1148_p4, %p1142_p1 }
  0x29   : > { %1152 = shalt.err (!%p1149_p3)
}
  0x2a   : > { %1011 = dma.hbm_to_vmem [thread:$0]  (!%p1413_p12), %s1580_s4, 1024, %s177_s18, [#allocation5], %s1308_s22, %s1308_s22, %s1309_s23  }
  0x2b   : > { %s1164_s15 = scalar_lea.vmem %s203_s20, 1024  ;;  %p1172_p11 = scmp.lt.s32.totalorder %s203_s20, %s203_s20 }
  0x2c   : > { %p1165_p7 = scmp.ne.s32.totalorder %s203_s20, %s1164_s15  ;;  %p1173_p0 = scmp.lt.s32.totalorder %s1164_s15, %s1164_s15 }
  0x2e   : > { %p1167_p8 = pnand %p1165_p7, %p1103_p13  ;;  %p1174_p5 = por %p1173_p0, %p1172_p11 }
  0x30   : > { %p1168_p2 = pneg %p1167_p8 }
  0x32   : > { %p1175_p6 = pnand %p1174_p5, %p1168_p2 }
  0x34   : > { %1178 = shalt.err (!%p1175_p6)
}
  0x35   : > { %1017 = dma.hbm_to_vmem [thread:$0]  (!%p1413_p12), %s1582_s6, 1024, %s203_s20, [#allocation8], %s1308_s22, %s1308_s22, %s1309_s23  }
  0x36   : > { %218 = sbr.rel (%p1405_p10) target bundleno = 1133 (0x46d), region = 40  ;;  %p1591_p9 = scmp.eq.s32.totalorder (!%p1405_p10), %s1375_s28, 0 }
  0x3b   : > { %1270 = dma.done.wait (%p1591_p9), [#allocation5], 1024   ;;  %p1592_p13 = pmov %p1591_p9 }
  0x3c   : > { %p1593_p1 = pmov %p1591_p9 }
  0x3d   : > { %1272 = vsyncadd (%p1592_p13), [#allocation5], 4294966272 }
  0x3e   : > { %1274 = dma.done.wait (%p1593_p1), [#allocation8], 2048   ;;  %p1594_p5 = pmov %p1593_p1 }
  0x3f   : > { %s246_s16 = sand.u32 1, %s1295_s25   ;;  %s1310_s13 = smov [#allocation2]  }
  0x40   : > { %1276 = vsyncadd (%p1594_p5), [#allocation8], 4294965248  ;;  %s1456_s18 = sshll.u32 %s246_s16, 1  ;;  %s261_s20 = sshll.u32 %s1310_s13, 4  ;;  %s262_s20 = int_to_ptr.vmem [resolvable:$true] %s261_s20 }
  0x41   : > { %s1189_s22 = scalar_lea.vmem %s262_s20, 256  ;;  %p1595_p12 = pmov %p1593_p1 }
  0x42   : > { %p1190_p10 = scmp.ne.s32.totalorder %s262_s20, %s1189_s22  ;;  %p1196_p7 = scmp.lt.s32.totalorder %s262_s20, %s262_s20 }
  0x43   : > { %p1197_p8 = scmp.lt.s32.totalorder %s1189_s22, %s1189_s22 }
  0x44   : > { %p1191_p4 = pnand %p1190_p10, %p1595_p12 }
  0x45   : > { %p1198_p2 = por %p1197_p8, %p1196_p7 }
  0x46   : > { %p1192_p3 = pneg %p1191_p4 }
  0x48   : > { %p1199_p11 = pnand %p1198_p2, %p1192_p3 }
  0x4a   : > { %1202 = shalt.err (!%p1199_p11)  }
  0x4b   : > { %p1596_p0 = pmov %p1593_p1  ;;  %s248_s8 = scalar_lea.vmem [#allocation10], %s1456_s18 }
  0x4d   : > { %1001 = dma.hbm_to_vmem [thread:$0]  (%p1596_p0), %s1576_s0, 256, %s262_s20, [#allocation3] }
  0x4e   : > { %p1597_p6 = pmov %p1596_p0 }
  0x4f   : > { %p1598_p9 = pmov %p1596_p0 }
  0x50   : > { %1278 = dma.done.wait (%p1597_p6), [#allocation3], 256 }
  0x51   : > { %1280 = vsyncadd (%p1598_p9), [#allocation3], 4294967040  ;;  %p1599_p13 = scmp.eq.s32.totalorder %s1375_s28, 1 }
  0x53   : > { %p1215_p1 = pnand %p1190_p10, %p1599_p13 }
  0x55   : > { %p1216_p5 = pneg %p1215_p1 }
  0x57   : > { %p1223_p12 = pnand %p1216_p5, %p1198_p2 }
  0x59   : > { %1226 = shalt.err (!%p1223_p12)  }
  0x5a   : > { %p1600_p4 = pmov %p1599_p13 }
  0x5c   : > { %1004 = dma.hbm_to_vmem [thread:$0]  (%p1600_p4), %s1577_s1, 256, %s262_s20, [#allocation3] }
  0x5d   : > { %p1601_p3 = pmov %p1600_p4 }
  0x5f   : > { %1282 = dma.done.wait (%p1601_p3), [#allocation3], 256  ;;  %p1602_p7 = pmov %p1601_p3 }
  0x60   : > { %vm298_vm0 = vcmask 1043456   ;;  %v290_v0 = vld [vmem:[#allocation2] sm:$0xff]  ;;  %v291_v1 = vld [vmem:[#allocation2 + $0x8] sm:$0xff]  ;;  %vm340_vm1 = vcmask 1041408   ;;  %v1311_v11 = vmov 0.0   ;;  %vm1312_vm2 = vmmov 0  }
  0x61   : > { %1284 = vsyncadd (%p1602_p7), [#allocation3], 4294967040  ;;  %v294_v2 = vcombine.high %v290_v0, %v290_v0  ;;  %v299_v3 = vsel %vm298_vm0, %v290_v0, 0.0  ;;  %v295_v4 = vcombine.high %v291_v1, %v291_v1  ;;  %v304_v5 = vsel %vm298_vm0, %v291_v1, 0.0  ;;  %v311_v10 = vld [vmem:[%s1578_s2] sm:$0x3]  ;;  %922 = vmatprep.subr.bf16.mxu0 %v1311_v11  ;;  %928 = vmatprep.subr.bf16.mxu1 %v1311_v11 }
  0x62   : > { %v342_v12 = vsel %vm340_vm1, %v311_v10, 0  ;;  %924 = vmatprep.mubr.msk.bf16.mxu0 %vm1312_vm2, %v1311_v11  ;;  %944 = vmatprep.mubr.msk.bf16.mxu1 %vm1312_vm2, %v1311_v11  ;;  %v1073_v13 = vld [vmem:[#allocation4 + $0x38] sm:$0xff]   ;;  %v1074_v14 = vld [vmem:[#allocation4 + $0x30] sm:$0xff]   ;;  %v1075_v15 = vld [vmem:[#allocation4 + $0x28] sm:$0xff]   ;;  %v323_v19 = vlaneseq  ;;  %vm333_vm3 = vcmask 1041409   ;;  %vm336_vm4 = vcmask 31744  }
  0x63   : > { %v300_v6 = vsel %vm298_vm0, %v294_v2, 0.0  ;;  %v305_v7 = vsel %vm298_vm0, %v295_v4, 0.0  ;;  %923 = vmatpush3.bf16.msra.mxu0 %v342_v12  ;;  %929 = vmatpush3.bf16.msra.mxu1 %v1073_v13  ;;  %v1076_v16 = vld [vmem:[#allocation4 + $0x20] sm:$0xff]   ;;  %v1077_v17 = vld [vmem:[#allocation4 + $0x18] sm:$0xff]   ;;  %v1078_v18 = vld [vmem:[#allocation4 + $0x10] sm:$0xff]   ;;  %s889_s13 = sshll.u32 %s1375_s28, 5 }
  0x64   : > { %v301_v8 = vadd.f32 %v300_v6, %v299_v3  ;;  %v306_v9 = vadd.f32 %v305_v7, %v304_v5  ;;  %948 = vmatprep.subr.bf16.mxu0 %v1311_v11  ;;  %930 = vmatprep.subr.bf16.mxu1 %v1311_v11  ;;  %v324_v21 = vand.u32 127, %v323_v19  ;;  %v326_v22 = vshrl.u32 %v323_v19, 7  ;;  %v1079_v33 = vld [vmem:[#allocation4 + $0x8] sm:$0xff]   ;;  %v1080_v34 = vld [vmem:[#allocation4] sm:$0xff]   ;;  %v862_v35 = vld [vmem:[%s1579_s3] ss:$0 sm:$0xff]  ;;  %s1531_s29 = scalar_lea.hbm %s1583_s7, %s889_s13 }
  0x65   : > { %v1081_v43 = vld [vmem:[#allocation7 + $0x38] sm:$0xff]   ;;  %v1082_v44 = vld [vmem:[#allocation7 + $0x30] sm:$0xff]   ;;  %v1083_v45 = vld [vmem:[#allocation7 + $0x28] sm:$0xff]   ;;  %s766_s20 = sshll.u32 %s248_s8, 4  ;;  %s753_s9 = scalar_lea.sflag [#allocation6], %s246_s16  ;;  %s1533_s20 = int_to_ptr.vmem [resolvable:$true] %s766_s20 }
  0x66   : > { %302 = vadd.xlane.f32.xlu0 %v301_v8  ;;  %v327_v25 = vsub.s32 %v324_v21, %v326_v22  ;;  %v1084_v46 = vld [vmem:[#allocation7 + $0x20] sm:$0xff]   ;;  %v1085_v47 = vld [vmem:[#allocation7 + $0x18] sm:$0xff]   ;;  %v1086_v48 = vld [vmem:[#allocation7 + $0x10] sm:$0xff]   ;;  %s1227_s14 = scalar_lea.vmem %s1533_s20, 32  ;;  %p1603_p8 = scmp.ne.s32.totalorder %s1587_s11, 0 }
  0x67   : > { %931 = vmatpush3.bf16.msra.mxu1 %v1074_v14  ;;  %v1087_v49 = vld [vmem:[#allocation7 + $0x8] sm:$0xff]   ;;  %v1088_v50 = vld [vmem:[#allocation7] sm:$0xff]   ;;  %v1090_v19 = vld [vmem:[#allocation9 + $0x30] sm:$0xff]   ;;  %p1228_p10 = scmp.ne.s32.totalorder %s1533_s20, %s1227_s14  ;;  %s1313_s28 = smov [#allocation10]  }
  0x68   : > { %932 = vmatprep.subr.bf16.mxu1 %v1311_v11  ;;  %v1092_v21 = vld [vmem:[#allocation9 + $0x20] sm:$0xff]   ;;  %v1093_v22 = vld [vmem:[#allocation9 + $0x18] sm:$0xff]   ;;  %s1231_s17 = sshll.u32 %s1313_s28, 4  ;;  %s1232_s17 = int_to_ptr.vmem [resolvable:$false] %s1231_s17 }
  0x69   : > { %p1229_p2 = pnand %p1228_p10, %p1603_p8  ;;  %s1233_s15 = scalar_lea.vmem %s1232_s17, 64 }
  0x6a   : > { %307 = vadd.xlane.f32.xlu0 %v306_v9  ;;  %p1234_p0 = scmp.lt.s32.totalorder %s1533_s20, %s1232_s17  ;;  %p1235_p6 = scmp.lt.s32.totalorder %s1233_s15, %s1227_s14 }
  0x6b   : > { %933 = vmatpush3.bf16.msra.mxu1 %v1075_v15  ;;  %p1230_p11 = pneg %p1229_p2 }
  0x6c   : > { %934 = vmatprep.subr.bf16.mxu1 %v1311_v11  ;;  %p1236_p9 = por %p1235_p6, %p1234_p0 }
  0x6e   : > { %p1237_p13 = pnand %p1236_p9, %p1230_p11 }
  0x6f   : > { %935 = vmatpush3.bf16.msra.mxu1 %v1076_v16 }
  0x70   : > { %936 = vmatprep.subr.bf16.mxu1 %v1311_v11 }
  0x73   : > { %937 = vmatpush3.bf16.msra.mxu1 %v1077_v17 }
  0x74   : > { %938 = vmatprep.subr.bf16.mxu1 %v1311_v11 }
  0x77   : > { %939 = vmatpush3.bf16.msra.mxu1 %v1078_v18  ;;  %v1089_v18 = vld [vmem:[#allocation9 + $0x38] sm:$0xff]  }
  0x78   : > { %940 = vmatprep.subr.bf16.mxu1 %v1311_v11 }
  0x7b   : > { %941 = vmatpush3.bf16.msra.mxu1 %v1079_v33 }
  0x7c   : > { %942 = vmatprep.subr.bf16.mxu1 %v1311_v11 }
  0x7f   : > { %943 = vmatpush3.bf16.msra.mxu1 %v1080_v34 }
  0x80   : > { %968 = vmatprep.subr.bf16.mxu1 %v1311_v11 }
  0xef   : > { %v303_v20 = vpop.xlane.xlu0 %302 }
  0xf0   : > { %v309_v23 = vpack.c.bf16 %v303_v20, %v303_v20  ;;  %v1091_v20 = vld [vmem:[#allocation9 + $0x28] sm:$0xff]  }
  0xf2   : > { %v321_v26 = vunpack.c.l.b16 %v309_v23  ;;  %v1094_v23 = vld [vmem:[#allocation9 + $0x10] sm:$0xff]  }
  0xf3   : > { %v308_v24 = vpop.xlane.xlu0 %307 }
  0xf4   : > { %v310_v27 = vpack.c.bf16 %v308_v24, %v308_v24  ;;  %v328_v29 = vrot.slane %v321_v26, %v327_v25  ;;  %v1095_v24 = vld [vmem:[#allocation9 + $0x8] sm:$0xff]  }
  0xf6   : > { %v322_v28 = vunpack.c.l.b16 %v310_v27 }
  0xf8   : > { %v332_v30 = vrot.slane %v322_v28, %v327_v25  ;;  %v1096_v25 = vld [vmem:[#allocation9] sm:$0xff]  }
  0xfa   : > { %v334_v31 = vsel %vm333_vm3, %v332_v30, %v328_v29 }
  0xfb   : > { %v335_v32 = vpack.c.b16 %v334_v31, %v334_v31 }
  0xfd   : > { %925 = vmatmul.mubr.msk.bf16.vlgmr.msra.gmra.mxu0 %vm336_vm4, %v335_v32 }
  0xfe   : > { %964 = vmatprep.mubr.msk.bf16.mxu0 %vm1312_vm2, %v1311_v11  ;;  %949 = vmatpush3.bf16.msra.mxu0 %v1081_v43 }
  0xff   : > { %950 = vmatprep.subr.bf16.mxu0 %v1311_v11 }
 0x102   : > { %951 = vmatpush3.bf16.msra.mxu0 %v1082_v44 }
 0x103   : > { %952 = vmatprep.subr.bf16.mxu0 %v1311_v11 }
 0x106   : > { %953 = vmatpush3.bf16.msra.mxu0 %v1083_v45 }
 0x107   : > { %954 = vmatprep.subr.bf16.mxu0 %v1311_v11 }
 0x10a   : > { %955 = vmatpush3.bf16.msra.mxu0 %v1084_v46 }
 0x10b   : > { %956 = vmatprep.subr.bf16.mxu0 %v1311_v11 }
 0x10e   : > { %957 = vmatpush3.bf16.msra.mxu0 %v1085_v47 }
 0x10f   : > { %958 = vmatprep.subr.bf16.mxu0 %v1311_v11 }
 0x112   : > { %959 = vmatpush3.bf16.msra.mxu0 %v1086_v48 }
 0x113   : > { %960 = vmatprep.subr.bf16.mxu0 %v1311_v11 }
 0x116   : > { %961 = vmatpush3.bf16.msra.mxu0 %v1087_v49 }
 0x117   : > { %962 = vmatprep.subr.bf16.mxu0 %v1311_v11 }
 0x11a   : > { %963 = vmatpush3.bf16.msra.mxu0 %v1088_v50 }
 0x1bd   : > { %v378_v36 = vpop.f32.mrf.mxu0 }
 0x1be   : > { %v379_v37 = vadd.f32 %v862_v35, %v378_v36 }
 0x1bf   : > { %v926_v38 = vpop.f32.mrf.mxu0 }
 0x1c0   : > { %v384_v39 = vmax.f32 %v379_v37, 0.0 }
 0x1c1   : > { %v381_v40 = vpop.f32.mrf.mxu0 }
 0x1c2   : > { %v385_v41 = vpack.c.bf16 %v384_v39, %v384_v39 }
 0x1c3   : > { %v927_v42 = vpop.f32.mrf.mxu0 }
 0x1c4   : > { %945 = vmatmul.mubr.bf16.vlgmr.msra.gmra.mxu1 %v385_v41 }
 0x1c5   : > { %984 = vmatprep.mubr.msk.bf16.mxu1 %vm1312_vm2, %v1311_v11  ;;  %969 = vmatpush3.bf16.msra.mxu1 %v1089_v18 }
 0x1c6   : > { %970 = vmatprep.subr.bf16.mxu1 %v1311_v11 }
 0x1c9   : > { %971 = vmatpush3.bf16.msra.mxu1 %v1090_v19 }
 0x1ca   : > { %972 = vmatprep.subr.bf16.mxu1 %v1311_v11 }
 0x1cd   : > { %973 = vmatpush3.bf16.msra.mxu1 %v1091_v20 }
 0x1ce   : > { %974 = vmatprep.subr.bf16.mxu1 %v1311_v11 }
 0x1d1   : > { %975 = vmatpush3.bf16.msra.mxu1 %v1092_v21 }
 0x1d2   : > { %976 = vmatprep.subr.bf16.mxu1 %v1311_v11 }
 0x1d5   : > { %977 = vmatpush3.bf16.msra.mxu1 %v1093_v22 }
 0x1d6   : > { %978 = vmatprep.subr.bf16.mxu1 %v1311_v11 }
 0x1d9   : > { %979 = vmatpush3.bf16.msra.mxu1 %v1094_v23 }
 0x1da   : > { %980 = vmatprep.subr.bf16.mxu1 %v1311_v11 }
 0x1dd   : > { %981 = vmatpush3.bf16.msra.mxu1 %v1095_v24 }
 0x1de   : > { %982 = vmatprep.subr.bf16.mxu1 %v1311_v11 }
 0x1e1   : > { %983 = vmatpush3.bf16.msra.mxu1 %v1096_v25 }
 0x284   : > { %v484_v51 = vpop.f32.mrf.mxu1 }
 0x285   : > { %v490_v52 = vsel %vm340_vm1, %v484_v51, 0.0  ;;  %v499_v53 = vmul.f32 %v484_v51, %v484_v51 }
 0x286   : > { %v491_v54 = vrot.slane %v490_v52, 4  ;;  %v946_v55 = vpop.f32.mrf.mxu1 }
 0x287   : > { %v500_v56 = vsel %vm340_vm1, %v499_v53, 0.0 }
 0x288   : > { %v492_v57 = vadd.f32 %v491_v54, %v490_v52  ;;  %v501_v58 = vrot.slane %v500_v56, 4  ;;  %v487_v59 = vpop.f32.mrf.mxu1 }
 0x28a   : > { %v493_v60 = vrot.slane %v492_v57, 2  ;;  %v502_v61 = vadd.f32 %v501_v58, %v500_v56  ;;  %v947_v62 = vpop.f32.mrf.mxu1 }
 0x28c   : > { %v494_v63 = vadd.f32 %v493_v60, %v492_v57  ;;  %v503_v0 = vrot.slane %v502_v61, 2 }
 0x28e   : > { %v495_v1 = vrot.slane %v494_v63, 1  ;;  %v504_v2 = vadd.f32 %v503_v0, %v502_v61 }
 0x290   : > { %v496_v3 = vadd.f32 %v495_v1, %v494_v63  ;;  %v505_v4 = vrot.slane %v504_v2, 1 }
 0x292   : > { %v498_v5 = vmul.f32 0.5, %v496_v3  ;;  %v506_v6 = vadd.f32 %v505_v4, %v504_v2 }
 0x294   : > { %v507_v7 = vmul.f32 0.5, %v506_v6  ;;  %v508_v8 = vmul.f32 %v498_v5, %v498_v5  ;;  %v511_v13 = vsub.f32 %v484_v51, %v498_v5 }
 0x296   : > { %v509_v9 = vsub.f32 %v507_v7, %v508_v8 }
 0x298   : > { %v510_v10 = vmax.f32 %v509_v9, 0.0 }
 0x29a   : > { %v512_v12 = vadd.f32 1e-05, %v510_v10 }
 0x29c   : > { %1097 = vrsqrt.f32 %v512_v12 }
 0x2a9   : > { %v1098_v14 = vpop.eup %1097 }
 0x2aa   : > { %v514_v15 = vmul.f32 %v1098_v14, %v511_v13 }
 0x2ac   : > { %v515_v16 = vmax.f32 %v514_v15, 0.0 }
 0x2ae   : > { %v516_v17 = vpack.c.bf16 %v515_v16, %v515_v16 }
 0x2b0   : > { %965 = vmatmul.mubr.bf16.vlgmr.msra.gmra.mxu0 %v516_v17 }
 0x370   : > { %v615_v26 = vpop.f32.mrf.mxu0 }
 0x371   : > { %v621_v27 = vsel %vm340_vm1, %v615_v26, 0.0  ;;  %v629_v28 = vmul.f32 %v615_v26, %v615_v26 }
 0x372   : > { %v622_v29 = vrot.slane %v621_v27, 4  ;;  %v966_v30 = vpop.f32.mrf.mxu0 }
 0x373   : > { %v630_v31 = vsel %vm340_vm1, %v629_v28, 0.0 }
 0x374   : > { %v623_v32 = vadd.f32 %v622_v29, %v621_v27  ;;  %v631_v33 = vrot.slane %v630_v31, 4  ;;  %v618_v34 = vpop.f32.mrf.mxu0 }
 0x376   : > { %v624_v35 = vrot.slane %v623_v32, 2  ;;  %v632_v36 = vadd.f32 %v631_v33, %v630_v31  ;;  %v967_v37 = vpop.f32.mrf.mxu0 }
 0x378   : > { %v625_v38 = vadd.f32 %v624_v35, %v623_v32  ;;  %v633_v39 = vrot.slane %v632_v36, 2 }
 0x37a   : > { %v626_v40 = vrot.slane %v625_v38, 1  ;;  %v634_v11 = vadd.f32 %v633_v39, %v632_v36 }
 0x37c   : > { %v627_v41 = vadd.f32 %v626_v40, %v625_v38  ;;  %v635_v42 = vrot.slane %v634_v11, 1 }
 0x37e   : > { %v628_v43 = vmul.f32 0.5, %v627_v41  ;;  %v636_v44 = vadd.f32 %v635_v42, %v634_v11 }
 0x380   : > { %v637_v45 = vmul.f32 0.5, %v636_v44  ;;  %v638_v46 = vmul.f32 %v628_v43, %v628_v43  ;;  %v641_v50 = vsub.f32 %v615_v26, %v628_v43 }
 0x382   : > { %v639_v47 = vsub.f32 %v637_v45, %v638_v46 }
 0x384   : > { %v640_v48 = vmax.f32 %v639_v47, 0.0 }
 0x386   : > { %v642_v49 = vadd.f32 1e-05, %v640_v48 }
 0x388   : > { %1099 = vrsqrt.f32 %v642_v49 }
 0x395   : > { %v1100_v51 = vpop.eup %1099 }
 0x396   : > { %v644_v52 = vmul.f32 %v1100_v51, %v641_v50 }
 0x398   : > { %v645_v53 = vmax.f32 %v644_v52, 0.0 }
 0x39a   : > { %v646_v54 = vpack.c.bf16 %v645_v53, %v645_v53 }
 0x39c   : > { %985 = vmatmul.mubr.bf16.vlgmr.msra.gmra.mxu1 %v646_v54 }
 0x45c   : > { %v745_v55 = vpop.f32.mrf.mxu1 }
 0x45d   : > { %751 = vst [vmem:[%s248_s8] sm:$0x3] %v745_v55 }
 0x45e   : > { %v986_v56 = vpop.f32.mrf.mxu1 }
 0x45f   : > { %1240 = shalt.err (!%p1237_p13)
}
 0x460   : > { %s1241_s18 = scalar_lea.hbm %s1531_s29, 32  ;;  %s1245_s19 = scalar_lea.hbm %s1583_s7, 64 }
 0x461   : > { %p1242_p1 = scmp.ne.s32.totalorder %s1531_s29, %s1241_s18  ;;  %p1246_p4 = scmp.lt.s32.totalorder %s1531_s29, %s1583_s7 }
 0x462   : > { %p1247_p3 = scmp.lt.s32.totalorder %s1245_s19, %s1241_s18 }
 0x463   : > { %p1243_p5 = pnand %p1242_p1, %p1603_p8 }
 0x464   : > { %p1248_p7 = por %p1247_p3, %p1246_p4 }
 0x465   : > { %p1244_p12 = pneg %p1243_p5 }
 0x467   : > { %p1249_p10 = pnand %p1248_p7, %p1244_p12 }
 0x469   : > { %1252 = shalt.err (!%p1249_p10)
}
 0x46a   : > { %1006 = dma.vmem_to_hbm [thread:$0]  (%p1603_p8), %s1533_s20, 32, %s1531_s29, %s753_s9   ;;  %v748_v57 = vpop.f32.mrf.mxu1 }
 0x46c   : > { %v987_v58 = vpop.f32.mrf.mxu1 }
 0x46d PF: > { %p1030_p2 = scmp.ge.s32.totalorder %s1303_s27, 2  ;;  %s778_s22 = sand.u32 1, %s1291_s24  }
 0x46e   : > { %p1604_p11 = scmp.ne.s32.totalorder %s1588_s12, 0  ;;  %s779_s23 = scalar_lea.sflag [#allocation6], %s778_s22 }
 0x470   : > { %p1019_p0 = pnand %p1030_p2, %p1604_p11 }
 0x472   : > { %p1020_p6 = pneg %p1019_p0 }
 0x474   : > { %1286 = dma.done.wait (%p1020_p6), %s779_s23, 32  }
 0x475   : > { %1288 = vsyncadd (%p1020_p6), %s779_s23, 4294967264  ;;  %p19_p8 = scmp.ge.s32.totalorder %s1379_s30, 4   ;;  %s1605_s24 = smov %s1295_s25 }
 0x476   : > { %s1606_s25 = smov %s1299_s26  ;;  %s1607_s26 = smov %s1390_s10 }
 0x477   : > { %s1608_s27 = smov %s1379_s30  ;;  %21 = sbr.rel (!%p19_p8) target bundleno = 5 (0x5), region = 101 }
 0x47c   :  { %784 = vsyncpa [#allocation5], 1 }
 0x47d   :  { %786 = vsyncpa [#allocation5 + $0x1], 1 }
 0x47e   :  { %787 = vsyncpa [#allocation8], 1 }
 0x47f   :  { %788 = vsyncpa [#allocation6], 1 }
 0x480   :  { %790 = vsyncpa [#allocation6 + $0x1], 1 }
 0x481   :  { %791 = vsyncmov [#allocation3] }
 0x484   :  { %s792_s27 = vpop.sfrf %791 }
 0x485   :  { %p892_p9 = scmp.ne.s32.totalorder %s792_s27, 0 }
 0x487   :  { %796 = shalt.err (%p892_p9)  }

</bundles_post_ra>
